<compile_context>
chip_gen: v7x
topology: tpu7x:2x2x1
jax: 0.10.0
libtpu: 0.0.40
codegen_flags: <defaults>
</compile_context>

<pallas_src>
import functools
import math

import jax
import jax.numpy as jnp
from jax.experimental import pallas as pl
from jax.experimental.pallas import tpu as pltpu


def _decoder_layer_kernel(xq_ref, xkv_ref, mask_ref,
                          wq_ref, bq_ref, wk_ref, bk_ref, wv_ref, bv_ref,
                          wch_ref, bc_ref, w1_ref, b1_ref, w2_ref, b2_ref,
                          gamma_ref, beta_ref,
                          out_ref,
                          kh_ref, vh_ref,          # VMEM scratch (H, L, dh) bf16
                          *, n_head, eps):
    f32 = jnp.float32
    bf16 = jnp.bfloat16
    qi = pl.program_id(1)

    x_q = xq_ref[0]                             # (tq, D) f32 (Q rows / residual)
    tq, D = x_q.shape
    dh = D // n_head

    # --- K/V projection: once per batch element, cached head-split in scratch.
    @pl.when(qi == 0)
    def _():
        x_kv = xkv_ref[0]                       # (L, D) bf16
        k = jnp.dot(x_kv, wk_ref[...], preferred_element_type=f32) + bk_ref[...]
        v = jnp.dot(x_kv, wv_ref[...], preferred_element_type=f32) + bv_ref[...]
        for h in range(n_head):                 # static unrolled head split
            kh_ref[h] = k[:, h * dh:(h + 1) * dh].astype(bf16)
            vh_ref[h] = v[:, h * dh:(h + 1) * dh].astype(bf16)

    # mask compare done exactly once; int8 storage widened to i32 first.
    keep = mask_ref[0, 0].astype(jnp.int32) != 0          # (tq, L) bool

    # --- Q projection (1/sqrt(dh) already folded into wq/bq in the wrapper) --
    xq_bf = x_q.astype(bf16)
    q = jnp.dot(xq_bf, wq_ref[...], preferred_element_type=f32) + bq_ref[...]
    qh = jnp.stack([q[:, h * dh:(h + 1) * dh] for h in range(n_head)],
                   axis=0).astype(bf16)                    # (H, tq, dh)

    kh = kh_ref[...]                                       # (H, L, dh) bf16
    vh = vh_ref[...]                                       # (H, L, dh) bf16

    # --- head-batched scaled-dot-product attention ---------------------------
    s = jnp.einsum('hqd,hkd->hqk', qh, kh,
                   preferred_element_type=f32)             # (H, tq, L), f32
    s = jnp.where(keep[None, :, :], s, f32(-10000.0))
    s = s - jnp.max(s, axis=-1, keepdims=True)
    p = jnp.exp(s)                                         # unnormalized probs
    denom = jnp.sum(p, axis=-1, keepdims=True)             # (H, tq, 1) f32
    o = jnp.einsum('hqk,hkd->hqd', p.astype(bf16), vh,
                   preferred_element_type=f32)             # (H, tq, dh)
    # normalize AFTER PV (fewer multiplies); reciprocal goes to the EUP slot
    o = o * pl.reciprocal(denom, approx=True)
    o_bf = o.astype(bf16)

    # --- output projection: head-sum fused as H accumulated 2-D MXU matmuls --
    attn = jnp.dot(o_bf[0], wch_ref[0], preferred_element_type=f32)
    for h in range(1, n_head):
        attn = attn + jnp.dot(o_bf[h], wch_ref[h], preferred_element_type=f32)
    attn = attn + bc_ref[...]                              # (tq, D) f32

    # --- PositionwiseFeedForward (dropout = identity) ------------------------
    hdn = jnp.dot(attn.astype(bf16), w1_ref[...], preferred_element_type=f32)
    hdn = jnp.maximum(hdn + b1_ref[...], f32(0.0))
    ffn = jnp.dot(hdn.astype(bf16), w2_ref[...], preferred_element_type=f32)
    ffn = ffn + b2_ref[...]

    # --- residual + LayerNorm (f32, rsqrt on the EUP) -------------------------
    z = ffn + x_q
    mean = jnp.mean(z, axis=-1, keepdims=True)
    zc = z - mean
    var = jnp.mean(zc * zc, axis=-1, keepdims=True)        # unbiased=False
    zn = zc * jax.lax.rsqrt(var + f32(eps))
    out_ref[0] = (gamma_ref[...] * zn + beta_ref[...]).astype(out_ref.dtype)


def _choose_block_q(L):
    for t in (256, 128, 64, 32, 16, 8):
        if L % t == 0:
            return t
    return L


def _default_vmem_limit_bytes():
    # ~90% of physical VMEM capped at 100 MiB: ~100 MiB on v5e/v6e (128 MiB
    # physical), ~57 MiB on v7x (64 MiB physical).  Conservative fallback.
    try:
        cap = pltpu.get_tpu_info().vmem_capacity_bytes
        return min(int(cap * 0.9), 100 * 1024 * 1024)
    except Exception:
        return 64 * 1024 * 1024


def decoder_layer(dec, mask, params, *, n_head, eps=1e-12, block_q=None,
                  vmem_limit_bytes=None):
    B, L, D = dec.shape
    H = params["w1"].shape[1]
    assert D % n_head == 0
    dh = D // n_head

    if block_q is None:
        block_q = _choose_block_q(L)
    assert L % block_q == 0, "block_q must divide L"
    n_qt = L // block_q

    if vmem_limit_bytes is None:
        vmem_limit_bytes = _default_vmem_limit_bytes()

    bf16 = jnp.bfloat16
    inv_sqrt_dh = 1.0 / math.sqrt(dh)

    # bf16 MXU weights (accumulation stays f32 in-kernel).
    # 1/sqrt(dh) folded into the Q projection (weight AND bias).
    wq = (params["wq"] * inv_sqrt_dh).astype(bf16)
    bq = params["bq"] * inv_sqrt_dh
    wk = params["wk"].astype(bf16)
    wv = params["wv"].astype(bf16)
    wc_h = params["wc"].reshape(n_head, dh, D).astype(bf16)   # per-head slabs
    w1 = params["w1"].astype(bf16)
    w2 = params["w2"].astype(bf16)

    dec_kv = dec.astype(bf16)                    # bf16 K/V activations
    mask_i8 = (mask != 0).astype(jnp.int8)       # 4x smaller mask DMA

    kernel = functools.partial(_decoder_layer_kernel, n_head=n_head, eps=eps)

    def const_spec(shape):
        # Grid-invariant + single-buffered: fetched once, never re-DMA'd, and
        # Buffered(1) avoids the default double-buffer VMEM cost.
        return pl.BlockSpec(shape, lambda b, qi: (0,) * len(shape),
                            pipeline_mode=pl.Buffered(1))

    in_specs = [
        pl.BlockSpec((1, block_q, D), lambda b, qi: (b, qi, 0)),        # dec (Q rows / residual, f32)
        pl.BlockSpec((1, L, D), lambda b, qi: (b, 0, 0)),               # dec (K/V rows, full L, bf16)
        pl.BlockSpec((1, 1, block_q, L), lambda b, qi: (b, 0, qi, 0)),  # mask tile (int8)
        const_spec((D, D)), const_spec((1, D)),                         # wq, bq
        const_spec((D, D)), const_spec((1, D)),                         # wk, bk
        const_spec((D, D)), const_spec((1, D)),                         # wv, bv
        const_spec((n_head, dh, D)), const_spec((1, D)),                # wc (per-head), bc
        const_spec((D, H)), const_spec((1, H)),                         # w1, b1
        const_spec((H, D)), const_spec((1, D)),                         # w2, b2
        const_spec((1, D)), const_spec((1, D)),                         # gamma, beta
    ]

    # NOTE(v7x megacore): with qi "arbitrary" the only parallel axis is B; if
    # B per chip < 2, either keep qi parallel (accept one K/V recompute per
    # core) or hoist the K/V projection into a separate pallas_call.
    return pl.pallas_call(
        kernel,
        out_shape=jax.ShapeDtypeStruct((B, L, D), jnp.float32),
        grid=(B, n_qt),
        in_specs=in_specs,
        out_specs=pl.BlockSpec((1, block_q, D), lambda b, qi: (b, qi, 0)),
        scratch_shapes=[pltpu.VMEM((n_head, L, dh), bf16),   # cached K heads
                        pltpu.VMEM((n_head, L, dh), bf16)],  # cached V heads
        compiler_params=pltpu.CompilerParams(
            dimension_semantics=("parallel", "arbitrary"),
            vmem_limit_bytes=vmem_limit_bytes),
    )(dec, dec_kv, mask_i8,
      wq, bq, wk, params["bk"], wv, params["bv"],
      wc_h, params["bc"], w1, params["b1"], w2, params["b2"],
      params["gamma"], params["beta"])


def decoder_layer_reference(dec, mask, params, *, n_head, eps=1e-12):
    """Pure-JAX f32 reference mirroring the PyTorch module (eval mode)."""
    B, L, D = dec.shape
    dh = D // n_head

    def linear(x, w, b):
        return x @ w + b[0]

    q = linear(dec, params["wq"], params["bq"])
    k = linear(dec, params["wk"], params["bk"])
    v = linear(dec, params["wv"], params["bv"])

    def split(t):
        return t.reshape(B, L, n_head, dh).transpose(0, 2, 1, 3)

    qh, kh, vh = split(q), split(k), split(v)
    score = (qh @ kh.transpose(0, 1, 3, 2)) / math.sqrt(dh)
    score = jnp.where(mask == 0, -10000.0, score)
    score = jax.nn.softmax(score, axis=-1)
    out = score @ vh
    out = out.transpose(0, 2, 1, 3).reshape(B, L, D)
    out = linear(out, params["wc"], params["bc"])

    h = jnp.maximum(linear(out, params["w1"], params["b1"]), 0.0)
    ffn = linear(h, params["w2"], params["b2"])

    z = ffn + dec
    mean = jnp.mean(z, axis=-1, keepdims=True)
    var = jnp.mean((z - mean) ** 2, axis=-1, keepdims=True)
    zn = (z - mean) / jnp.sqrt(var + eps)
    return params["gamma"][0] * zn + params["beta"][0]


def make_params(key, d_model, ffn_hidden):
    keys = jax.random.split(key, 12)
    s = 1.0 / math.sqrt(d_model)
    sh = 1.0 / math.sqrt(ffn_hidden)
    return {
        "wq": jax.random.uniform(keys[0], (d_model, d_model), jnp.float32, -s, s),
        "bq": jax.random.uniform(keys[1], (1, d_model), jnp.float32, -s, s),
        "wk": jax.random.uniform(keys[2], (d_model, d_model), jnp.float32, -s, s),
        "bk": jax.random.uniform(keys[3], (1, d_model), jnp.float32, -s, s),
        "wv": jax.random.uniform(keys[4], (d_model, d_model), jnp.float32, -s, s),
        "bv": jax.random.uniform(keys[5], (1, d_model), jnp.float32, -s, s),
        "wc": jax.random.uniform(keys[6], (d_model, d_model), jnp.float32, -s, s),
        "bc": jax.random.uniform(keys[7], (1, d_model), jnp.float32, -s, s),
        "w1": jax.random.uniform(keys[8], (d_model, ffn_hidden), jnp.float32, -s, s),
        "b1": jax.random.uniform(keys[9], (1, ffn_hidden), jnp.float32, -s, s),
        "w2": jax.random.uniform(keys[10], (ffn_hidden, d_model), jnp.float32, -sh, sh),
        "b2": jax.random.uniform(keys[11], (1, d_model), jnp.float32, -sh, sh),
        "gamma": jnp.ones((1, d_model), jnp.float32),
        "beta": jnp.zeros((1, d_model), jnp.float32),
    }


if __name__ == "__main__":
    # small shapes; block_q=8 forces n_qt=2 so the cached-KV "arbitrary" qi
    # path (scratch reuse across Q tiles) is actually exercised.
    B, L, d_model, n_head, ffn_hidden = 2, 16, 32, 4, 64

    key = jax.random.PRNGKey(0)
    kx, kp = jax.random.split(key)
    dec = jax.random.normal(kx, (B, L, d_model), jnp.float32)

    # causal target mask: 1 = attend, 0 = masked
    causal = jnp.tril(jnp.ones((L, L), jnp.int32))
    trg_mask = jnp.broadcast_to(causal[None, None, :, :], (B, 1, L, L))

    params = make_params(kp, d_model, ffn_hidden)

    out = decoder_layer(dec, trg_mask, params, n_head=n_head, block_q=8)
    out = jax.block_until_ready(out)

    ref = decoder_layer_reference(dec, trg_mask, params, n_head=n_head)
    assert out.shape == (B, L, d_model)
    # bf16 MXU operands (f32 accumulation) + approx reciprocal => compare
    # against the pure-f32 reference with a bf16-appropriate tolerance.
    err = jnp.max(jnp.abs(out - ref))
    assert jnp.allclose(out, ref, atol=5e-2, rtol=5e-2), f"max abs err {err}"

    print("KERNEL_OK")
</pallas_src>

<mosaic_0001>
module attributes {stable_mosaic.version = 11 : i64} {
  func.func @_decoder_layer_kernel(%arg0: i32, %arg1: i32, %arg2: memref<1x8x32xf32, #tpu.memory_space<vmem>>, %arg3: memref<1x16x32xbf16, #tpu.memory_space<vmem>>, %arg4: memref<1x1x8x16xi8, #tpu.memory_space<vmem>>, %arg5: memref<32x32xbf16, #tpu.memory_space<vmem>>, %arg6: memref<1x32xf32, #tpu.memory_space<vmem>>, %arg7: memref<32x32xbf16, #tpu.memory_space<vmem>>, %arg8: memref<1x32xf32, #tpu.memory_space<vmem>>, %arg9: memref<32x32xbf16, #tpu.memory_space<vmem>>, %arg10: memref<1x32xf32, #tpu.memory_space<vmem>>, %arg11: memref<4x8x32xbf16, #tpu.memory_space<vmem>>, %arg12: memref<1x32xf32, #tpu.memory_space<vmem>>, %arg13: memref<32x64xbf16, #tpu.memory_space<vmem>>, %arg14: memref<1x64xf32, #tpu.memory_space<vmem>>, %arg15: memref<64x32xbf16, #tpu.memory_space<vmem>>, %arg16: memref<1x32xf32, #tpu.memory_space<vmem>>, %arg17: memref<1x32xf32, #tpu.memory_space<vmem>>, %arg18: memref<1x32xf32, #tpu.memory_space<vmem>>, %arg19: memref<1x8x32xf32, #tpu.memory_space<vmem>>, %arg20: memref<4x16x8xbf16, #tpu.memory_space<vmem>>, %arg21: memref<4x16x8xbf16, #tpu.memory_space<vmem>>) attributes {dimension_semantics = [#tpu.dimension_semantics<parallel>, #tpu.dimension_semantics<arbitrary>], iteration_bounds = array<i64: 2, 2>, scalar_prefetch = 0 : i64, scratch_operands = 2 : i64, tpu.core_type = #tpu.core_type<tc>, window_params = [{transform_indices = @transform_0, window_bounds = array<i64: 1, 8, 32>}, {transform_indices = @transform_1, window_bounds = array<i64: 1, 16, 32>}, {transform_indices = @transform_2, window_bounds = array<i64: 1, 1, 8, 16>}, {pipeline_mode = #tpu.pipeline_mode<synchronous>, transform_indices = @transform_3, window_bounds = array<i64: 32, 32>}, {pipeline_mode = #tpu.pipeline_mode<synchronous>, transform_indices = @transform_4, window_bounds = array<i64: 1, 32>}, {pipeline_mode = #tpu.pipeline_mode<synchronous>, transform_indices = @transform_5, window_bounds = array<i64: 32, 32>}, {pipeline_mode = #tpu.pipeline_mode<synchronous>, transform_indices = @transform_6, window_bounds = array<i64: 1, 32>}, {pipeline_mode = #tpu.pipeline_mode<synchronous>, transform_indices = @transform_7, window_bounds = array<i64: 32, 32>}, {pipeline_mode = #tpu.pipeline_mode<synchronous>, transform_indices = @transform_8, window_bounds = array<i64: 1, 32>}, {pipeline_mode = #tpu.pipeline_mode<synchronous>, transform_indices = @transform_9, window_bounds = array<i64: 4, 8, 32>}, {pipeline_mode = #tpu.pipeline_mode<synchronous>, transform_indices = @transform_10, window_bounds = array<i64: 1, 32>}, {pipeline_mode = #tpu.pipeline_mode<synchronous>, transform_indices = @transform_11, window_bounds = array<i64: 32, 64>}, {pipeline_mode = #tpu.pipeline_mode<synchronous>, transform_indices = @transform_12, window_bounds = array<i64: 1, 64>}, {pipeline_mode = #tpu.pipeline_mode<synchronous>, transform_indices = @transform_13, window_bounds = array<i64: 64, 32>}, {pipeline_mode = #tpu.pipeline_mode<synchronous>, transform_indices = @transform_14, window_bounds = array<i64: 1, 32>}, {pipeline_mode = #tpu.pipeline_mode<synchronous>, transform_indices = @transform_15, window_bounds = array<i64: 1, 32>}, {pipeline_mode = #tpu.pipeline_mode<synchronous>, transform_indices = @transform_16, window_bounds = array<i64: 1, 32>}, {transform_indices = @transform_17, window_bounds = array<i64: 1, 8, 32>}]} {
    %c0 = arith.constant 0 : index
    %c0_0 = arith.constant 0 : index
    %c0_1 = arith.constant 0 : index
    %0 = vector.load %arg2[%c0, %c0_0, %c0_1] : memref<1x8x32xf32, #tpu.memory_space<vmem>>, vector<1x8x32xf32>
    %1 = vector.shape_cast %0 : vector<1x8x32xf32> to vector<8x32xf32>
    %c0_i32 = arith.constant 0 : i32
    %2 = arith.cmpi eq, %arg1, %c0_i32 : i32
    %3 = arith.extui %2 : i1 to i32
    %c0_i32_2 = arith.constant 0 : i32
    %4 = arith.cmpi ne, %3, %c0_i32_2 : i32
    scf.if %4 {
      %c0_61 = arith.constant 0 : index
      %c0_62 = arith.constant 0 : index
      %c0_63 = arith.constant 0 : index
      %113 = vector.load %arg3[%c0_61, %c0_62, %c0_63] : memref<1x16x32xbf16, #tpu.memory_space<vmem>>, vector<1x16x32xbf16>
      %114 = vector.shape_cast %113 : vector<1x16x32xbf16> to vector<16x32xbf16>
      %c0_64 = arith.constant 0 : index
      %c0_65 = arith.constant 0 : index
      %115 = vector.load %arg7[%c0_64, %c0_65] : memref<32x32xbf16, #tpu.memory_space<vmem>>, vector<32x32xbf16>
      %cst_66 = arith.constant dense<0.000000e+00> : vector<16x32xf32>
      %116 = tpu.matmul %114, %115, %cst_66 {dimension_numbers = #tpu.dot_dimension_numbers<[1], [0], [0], [1], [0, 0, 1, 1], [], []>} : vector<16x32xbf16>, vector<32x32xbf16>, vector<16x32xf32> -> vector<16x32xf32>
      %c0_67 = arith.constant 0 : index
      %c0_68 = arith.constant 0 : index
      %117 = vector.load %arg8[%c0_67, %c0_68] : memref<1x32xf32, #tpu.memory_space<vmem>>, vector<1x32xf32>
      %118 = vector.broadcast %117 : vector<1x32xf32> to vector<16x32xf32>
      %119 = arith.addf %116, %118 : vector<16x32xf32>
      %c0_69 = arith.constant 0 : index
      %c0_70 = arith.constant 0 : index
      %120 = vector.load %arg9[%c0_69, %c0_70] : memref<32x32xbf16, #tpu.memory_space<vmem>>, vector<32x32xbf16>
      %cst_71 = arith.constant dense<0.000000e+00> : vector<16x32xf32>
      %121 = tpu.matmul %114, %120, %cst_71 {dimension_numbers = #tpu.dot_dimension_numbers<[1], [0], [0], [1], [0, 0, 1, 1], [], []>} : vector<16x32xbf16>, vector<32x32xbf16>, vector<16x32xf32> -> vector<16x32xf32>
      %c0_72 = arith.constant 0 : index
      %c0_73 = arith.constant 0 : index
      %122 = vector.load %arg10[%c0_72, %c0_73] : memref<1x32xf32, #tpu.memory_space<vmem>>, vector<1x32xf32>
      %123 = vector.broadcast %122 : vector<1x32xf32> to vector<16x32xf32>
      %124 = arith.addf %121, %123 : vector<16x32xf32>
      %125 = vector.extract_strided_slice %119 {offsets = [0, 0], sizes = [16, 8], strides = [1, 1]} : vector<16x32xf32> to vector<16x8xf32>
      %126 = arith.truncf %125 : vector<16x8xf32> to vector<16x8xbf16>
      %c0_74 = arith.constant 0 : index
      %c0_75 = arith.constant 0 : index
      %c0_76 = arith.constant 0 : index
      %127 = vector.load %arg20[%c0_74, %c0_75, %c0_76] : memref<4x16x8xbf16, #tpu.memory_space<vmem>>, vector<1x16x8xbf16>
      %128 = vector.shape_cast %127 : vector<1x16x8xbf16> to vector<16x8xbf16>
      %129 = vector.shape_cast %126 : vector<16x8xbf16> to vector<1x16x8xbf16>
      tpu.vector_store %arg20[%c0_74, %c0_75, %c0_76], %129 {strides = array<i32>} : memref<4x16x8xbf16, #tpu.memory_space<vmem>>, vector<1x16x8xbf16>,
      %130 = vector.extract_strided_slice %124 {offsets = [0, 0], sizes = [16, 8], strides = [1, 1]} : vector<16x32xf32> to vector<16x8xf32>
      %131 = arith.truncf %130 : vector<16x8xf32> to vector<16x8xbf16>
      %c0_77 = arith.constant 0 : index
      %c0_78 = arith.constant 0 : index
      %c0_79 = arith.constant 0 : index
      %132 = vector.load %arg21[%c0_77, %c0_78, %c0_79] : memref<4x16x8xbf16, #tpu.memory_space<vmem>>, vector<1x16x8xbf16>
      %133 = vector.shape_cast %132 : vector<1x16x8xbf16> to vector<16x8xbf16>
      %134 = vector.shape_cast %131 : vector<16x8xbf16> to vector<1x16x8xbf16>
      tpu.vector_store %arg21[%c0_77, %c0_78, %c0_79], %134 {strides = array<i32>} : memref<4x16x8xbf16, #tpu.memory_space<vmem>>, vector<1x16x8xbf16>,
      %135 = vector.extract_strided_slice %119 {offsets = [0, 8], sizes = [16, 8], strides = [1, 1]} : vector<16x32xf32> to vector<16x8xf32>
      %136 = arith.truncf %135 : vector<16x8xf32> to vector<16x8xbf16>
      %c1_80 = arith.constant 1 : index
      %c0_81 = arith.constant 0 : index
      %c0_82 = arith.constant 0 : index
      %137 = vector.load %arg20[%c1_80, %c0_81, %c0_82] : memref<4x16x8xbf16, #tpu.memory_space<vmem>>, vector<1x16x8xbf16>
      %138 = vector.shape_cast %137 : vector<1x16x8xbf16> to vector<16x8xbf16>
      %139 = vector.shape_cast %136 : vector<16x8xbf16> to vector<1x16x8xbf16>
      tpu.vector_store %arg20[%c1_80, %c0_81, %c0_82], %139 {strides = array<i32>} : memref<4x16x8xbf16, #tpu.memory_space<vmem>>, vector<1x16x8xbf16>,
      %140 = vector.extract_strided_slice %124 {offsets = [0, 8], sizes = [16, 8], strides = [1, 1]} : vector<16x32xf32> to vector<16x8xf32>
      %141 = arith.truncf %140 : vector<16x8xf32> to vector<16x8xbf16>
      %c1_83 = arith.constant 1 : index
      %c0_84 = arith.constant 0 : index
      %c0_85 = arith.constant 0 : index
      %142 = vector.load %arg21[%c1_83, %c0_84, %c0_85] : memref<4x16x8xbf16, #tpu.memory_space<vmem>>, vector<1x16x8xbf16>
      %143 = vector.shape_cast %142 : vector<1x16x8xbf16> to vector<16x8xbf16>
      %144 = vector.shape_cast %141 : vector<16x8xbf16> to vector<1x16x8xbf16>
      tpu.vector_store %arg21[%c1_83, %c0_84, %c0_85], %144 {strides = array<i32>} : memref<4x16x8xbf16, #tpu.memory_space<vmem>>, vector<1x16x8xbf16>,
      %145 = vector.extract_strided_slice %119 {offsets = [0, 16], sizes = [16, 8], strides = [1, 1]} : vector<16x32xf32> to vector<16x8xf32>
      %146 = arith.truncf %145 : vector<16x8xf32> to vector<16x8xbf16>
      %c2_86 = arith.constant 2 : index
      %c0_87 = arith.constant 0 : index
      %c0_88 = arith.constant 0 : index
      %147 = vector.load %arg20[%c2_86, %c0_87, %c0_88] : memref<4x16x8xbf16, #tpu.memory_space<vmem>>, vector<1x16x8xbf16>
      %148 = vector.shape_cast %147 : vector<1x16x8xbf16> to vector<16x8xbf16>
      %149 = vector.shape_cast %146 : vector<16x8xbf16> to vector<1x16x8xbf16>
      tpu.vector_store %arg20[%c2_86, %c0_87, %c0_88], %149 {strides = array<i32>} : memref<4x16x8xbf16, #tpu.memory_space<vmem>>, vector<1x16x8xbf16>,
      %150 = vector.extract_strided_slice %124 {offsets = [0, 16], sizes = [16, 8], strides = [1, 1]} : vector<16x32xf32> to vector<16x8xf32>
      %151 = arith.truncf %150 : vector<16x8xf32> to vector<16x8xbf16>
      %c2_89 = arith.constant 2 : index
      %c0_90 = arith.constant 0 : index
      %c0_91 = arith.constant 0 : index
      %152 = vector.load %arg21[%c2_89, %c0_90, %c0_91] : memref<4x16x8xbf16, #tpu.memory_space<vmem>>, vector<1x16x8xbf16>
      %153 = vector.shape_cast %152 : vector<1x16x8xbf16> to vector<16x8xbf16>
      %154 = vector.shape_cast %151 : vector<16x8xbf16> to vector<1x16x8xbf16>
      tpu.vector_store %arg21[%c2_89, %c0_90, %c0_91], %154 {strides = array<i32>} : memref<4x16x8xbf16, #tpu.memory_space<vmem>>, vector<1x16x8xbf16>,
      %155 = vector.extract_strided_slice %119 {offsets = [0, 24], sizes = [16, 8], strides = [1, 1]} : vector<16x32xf32> to vector<16x8xf32>
      %156 = arith.truncf %155 : vector<16x8xf32> to vector<16x8xbf16>
      %c3_92 = arith.constant 3 : index
      %c0_93 = arith.constant 0 : index
      %c0_94 = arith.constant 0 : index
      %157 = vector.load %arg20[%c3_92, %c0_93, %c0_94] : memref<4x16x8xbf16, #tpu.memory_space<vmem>>, vector<1x16x8xbf16>
      %158 = vector.shape_cast %157 : vector<1x16x8xbf16> to vector<16x8xbf16>
      %159 = vector.shape_cast %156 : vector<16x8xbf16> to vector<1x16x8xbf16>
      tpu.vector_store %arg20[%c3_92, %c0_93, %c0_94], %159 {strides = array<i32>} : memref<4x16x8xbf16, #tpu.memory_space<vmem>>, vector<1x16x8xbf16>,
      %160 = vector.extract_strided_slice %124 {offsets = [0, 24], sizes = [16, 8], strides = [1, 1]} : vector<16x32xf32> to vector<16x8xf32>
      %161 = arith.truncf %160 : vector<16x8xf32> to vector<16x8xbf16>
      %c3_95 = arith.constant 3 : index
      %c0_96 = arith.constant 0 : index
      %c0_97 = arith.constant 0 : index
      %162 = vector.load %arg21[%c3_95, %c0_96, %c0_97] : memref<4x16x8xbf16, #tpu.memory_space<vmem>>, vector<1x16x8xbf16>
      %163 = vector.shape_cast %162 : vector<1x16x8xbf16> to vector<16x8xbf16>
      %164 = vector.shape_cast %161 : vector<16x8xbf16> to vector<1x16x8xbf16>
      tpu.vector_store %arg21[%c3_95, %c0_96, %c0_97], %164 {strides = array<i32>} : memref<4x16x8xbf16, #tpu.memory_space<vmem>>, vector<1x16x8xbf16>,
    } else {
    }
    %c0_3 = arith.constant 0 : index
    %c0_4 = arith.constant 0 : index
    %c0_5 = arith.constant 0 : index
    %c0_6 = arith.constant 0 : index
    %5 = vector.load %arg4[%c0_3, %c0_4, %c0_5, %c0_6] : memref<1x1x8x16xi8, #tpu.memory_space<vmem>>, vector<1x1x8x16xi8>
    %6 = vector.shape_cast %5 : vector<1x1x8x16xi8> to vector<8x16xi8>
    %7 = arith.extsi %6 : vector<8x16xi8> to vector<8x16xi32>
    %c0_i32_7 = arith.constant 0 : i32
    %8 = vector.broadcast %c0_i32_7 : i32 to vector<8x16xi32>
    %9 = arith.cmpi ne, %7, %8 : vector<8x16xi32>
    %10 = arith.truncf %1 : vector<8x32xf32> to vector<8x32xbf16>
    %c0_8 = arith.constant 0 : index
    %c0_9 = arith.constant 0 : index
    %11 = vector.load %arg5[%c0_8, %c0_9] : memref<32x32xbf16, #tpu.memory_space<vmem>>, vector<32x32xbf16>
    %cst = arith.constant dense<0.000000e+00> : vector<8x32xf32>
    %12 = tpu.matmul %10, %11, %cst {dimension_numbers = #tpu.dot_dimension_numbers<[1], [0], [0], [1], [0, 0, 1, 1], [], []>} : vector<8x32xbf16>, vector<32x32xbf16>, vector<8x32xf32> -> vector<8x32xf32>
    %c0_10 = arith.constant 0 : index
    %c0_11 = arith.constant 0 : index
    %13 = vector.load %arg6[%c0_10, %c0_11] : memref<1x32xf32, #tpu.memory_space<vmem>>, vector<1x32xf32>
    %14 = vector.broadcast %13 : vector<1x32xf32> to vector<8x32xf32>
    %15 = arith.addf %12, %14 : vector<8x32xf32>
    %16 = vector.extract_strided_slice %15 {offsets = [0, 0], sizes = [8, 8], strides = [1, 1]} : vector<8x32xf32> to vector<8x8xf32>
    %17 = vector.extract_strided_slice %15 {offsets = [0, 8], sizes = [8, 8], strides = [1, 1]} : vector<8x32xf32> to vector<8x8xf32>
    %18 = vector.extract_strided_slice %15 {offsets = [0, 16], sizes = [8, 8], strides = [1, 1]} : vector<8x32xf32> to vector<8x8xf32>
    %19 = vector.extract_strided_slice %15 {offsets = [0, 24], sizes = [8, 8], strides = [1, 1]} : vector<8x32xf32> to vector<8x8xf32>
    %20 = vector.shape_cast %16 : vector<8x8xf32> to vector<1x8x8xf32>
    %21 = vector.shape_cast %17 : vector<8x8xf32> to vector<1x8x8xf32>
    %22 = vector.shape_cast %18 : vector<8x8xf32> to vector<1x8x8xf32>
    %23 = vector.shape_cast %19 : vector<8x8xf32> to vector<1x8x8xf32>
    %24 = tpu.concatenate %20, %21, %22, %23 in 0 : vector<1x8x8xf32>, vector<1x8x8xf32>, vector<1x8x8xf32>, vector<1x8x8xf32> -> vector<4x8x8xf32>
    %25 = arith.truncf %24 : vector<4x8x8xf32> to vector<4x8x8xbf16>
    %c0_12 = arith.constant 0 : index
    %c0_13 = arith.constant 0 : index
    %c0_14 = arith.constant 0 : index
    %26 = vector.load %arg20[%c0_12, %c0_13, %c0_14] : memref<4x16x8xbf16, #tpu.memory_space<vmem>>, vector<4x16x8xbf16>
    %c0_15 = arith.constant 0 : index
    %c0_16 = arith.constant 0 : index
    %c0_17 = arith.constant 0 : index
    %27 = vector.load %arg21[%c0_15, %c0_16, %c0_17] : memref<4x16x8xbf16, #tpu.memory_space<vmem>>, vector<4x16x8xbf16>
    "tpu.trace_start"() <{level = 10 : i32, message = "hqd,hkd->hqk"}> : () -> ()
    %cst_18 = arith.constant dense<0.000000e+00> : vector<4x8x16xf32>
    %28 = tpu.matmul %25, %26, %cst_18 {dimension_numbers = #tpu.dot_dimension_numbers<[2], [2], [1], [1], [0, 0, 0, 1, 1, 1], [0], [0]>} : vector<4x8x8xbf16>, vector<4x16x8xbf16>, vector<4x8x16xf32> -> vector<4x8x16xf32>
    "tpu.trace_stop"() : () -> ()
    %29 = vector.shape_cast %9 : vector<8x16xi1> to vector<1x8x16xi1>
    %cst_19 = arith.constant -1.000000e+04 : f32
    %30 = vector.shape_cast %29 : vector<1x8x16xi1> to vector<1x8x16xi1>
    %31 = vector.broadcast %30 : vector<1x8x16xi1> to vector<4x8x16xi1>
    %32 = vector.broadcast %cst_19 : f32 to vector<4x8x16xf32>
    %33 = arith.select %31, %28, %32 : vector<4x8x16xi1>, vector<4x8x16xf32>
    %cst_20 = arith.constant dense<0xFF800000> : vector<4x8xf32>
    %34 = vector.multi_reduction <maximumf>, %33, %cst_20 [2] : vector<4x8x16xf32> to vector<4x8xf32>
    %35 = vector.shape_cast %34 : vector<4x8xf32> to vector<4x8x1xf32>
    %36 = vector.broadcast %35 : vector<4x8x1xf32> to vector<4x8x16xf32>
    %37 = arith.subf %33, %36 : vector<4x8x16xf32>
    %38 = math.exp %37 : vector<4x8x16xf32>
    %cst_21 = arith.constant dense<0.000000e+00> : vector<4x8xf32>
    %39 = vector.multi_reduction <add>, %38, %cst_21 [2] : vector<4x8x16xf32> to vector<4x8xf32>
    %40 = vector.shape_cast %39 : vector<4x8xf32> to vector<4x8x1xf32>
    %41 = arith.truncf %38 : vector<4x8x16xf32> to vector<4x8x16xbf16>
    "tpu.trace_start"() <{level = 10 : i32, message = "hqk,hkd->hqd"}> : () -> ()
    %cst_22 = arith.constant dense<0.000000e+00> : vector<4x8x8xf32>
    %42 = tpu.matmul %41, %27, %cst_22 {dimension_numbers = #tpu.dot_dimension_numbers<[2], [1], [1], [2], [0, 0, 0, 1, 1, 2], [0], [0]>} : vector<4x8x16xbf16>, vector<4x16x8xbf16>, vector<4x8x8xf32> -> vector<4x8x8xf32>
    "tpu.trace_stop"() : () -> ()
    %43 = tpu.reciprocal %40 {approx = true} : vector<4x8x1xf32> -> vector<4x8x1xf32>
    %44 = vector.broadcast %43 : vector<4x8x1xf32> to vector<4x8x8xf32>
    %45 = arith.mulf %42, %44 : vector<4x8x8xf32>
    %46 = arith.truncf %45 : vector<4x8x8xf32> to vector<4x8x8xbf16>
    %47 = vector.extract_strided_slice %46 {offsets = [0, 0, 0], sizes = [1, 8, 8], strides = [1, 1, 1]} : vector<4x8x8xbf16> to vector<1x8x8xbf16>
    %48 = vector.shape_cast %47 : vector<1x8x8xbf16> to vector<8x8xbf16>
    %c0_23 = arith.constant 0 : index
    %c0_24 = arith.constant 0 : index
    %c0_25 = arith.constant 0 : index
    %49 = vector.load %arg11[%c0_23, %c0_24, %c0_25] : memref<4x8x32xbf16, #tpu.memory_space<vmem>>, vector<1x8x32xbf16>
    %50 = vector.shape_cast %49 : vector<1x8x32xbf16> to vector<8x32xbf16>
    %cst_26 = arith.constant dense<0.000000e+00> : vector<8x32xf32>
    %51 = tpu.matmul %48, %50, %cst_26 {dimension_numbers = #tpu.dot_dimension_numbers<[1], [0], [0], [1], [0, 0, 1, 1], [], []>} : vector<8x8xbf16>, vector<8x32xbf16>, vector<8x32xf32> -> vector<8x32xf32>
    %52 = vector.extract_strided_slice %46 {offsets = [1, 0, 0], sizes = [1, 8, 8], strides = [1, 1, 1]} : vector<4x8x8xbf16> to vector<1x8x8xbf16>
    %53 = vector.shape_cast %52 : vector<1x8x8xbf16> to vector<8x8xbf16>
    %c1 = arith.constant 1 : index
    %c0_27 = arith.constant 0 : index
    %c0_28 = arith.constant 0 : index
    %54 = vector.load %arg11[%c1, %c0_27, %c0_28] : memref<4x8x32xbf16, #tpu.memory_space<vmem>>, vector<1x8x32xbf16>
    %55 = vector.shape_cast %54 : vector<1x8x32xbf16> to vector<8x32xbf16>
    %cst_29 = arith.constant dense<0.000000e+00> : vector<8x32xf32>
    %56 = tpu.matmul %53, %55, %cst_29 {dimension_numbers = #tpu.dot_dimension_numbers<[1], [0], [0], [1], [0, 0, 1, 1], [], []>} : vector<8x8xbf16>, vector<8x32xbf16>, vector<8x32xf32> -> vector<8x32xf32>
    %57 = arith.addf %51, %56 : vector<8x32xf32>
    %58 = vector.extract_strided_slice %46 {offsets = [2, 0, 0], sizes = [1, 8, 8], strides = [1, 1, 1]} : vector<4x8x8xbf16> to vector<1x8x8xbf16>
    %59 = vector.shape_cast %58 : vector<1x8x8xbf16> to vector<8x8xbf16>
    %c2 = arith.constant 2 : index
    %c0_30 = arith.constant 0 : index
    %c0_31 = arith.constant 0 : index
    %60 = vector.load %arg11[%c2, %c0_30, %c0_31] : memref<4x8x32xbf16, #tpu.memory_space<vmem>>, vector<1x8x32xbf16>
    %61 = vector.shape_cast %60 : vector<1x8x32xbf16> to vector<8x32xbf16>
    %cst_32 = arith.constant dense<0.000000e+00> : vector<8x32xf32>
    %62 = tpu.matmul %59, %61, %cst_32 {dimension_numbers = #tpu.dot_dimension_numbers<[1], [0], [0], [1], [0, 0, 1, 1], [], []>} : vector<8x8xbf16>, vector<8x32xbf16>, vector<8x32xf32> -> vector<8x32xf32>
    %63 = arith.addf %57, %62 : vector<8x32xf32>
    %64 = vector.extract_strided_slice %46 {offsets = [3, 0, 0], sizes = [1, 8, 8], strides = [1, 1, 1]} : vector<4x8x8xbf16> to vector<1x8x8xbf16>
    %65 = vector.shape_cast %64 : vector<1x8x8xbf16> to vector<8x8xbf16>
    %c3 = arith.constant 3 : index
    %c0_33 = arith.constant 0 : index
    %c0_34 = arith.constant 0 : index
    %66 = vector.load %arg11[%c3, %c0_33, %c0_34] : memref<4x8x32xbf16, #tpu.memory_space<vmem>>, vector<1x8x32xbf16>
    %67 = vector.shape_cast %66 : vector<1x8x32xbf16> to vector<8x32xbf16>
    %cst_35 = arith.constant dense<0.000000e+00> : vector<8x32xf32>
    %68 = tpu.matmul %65, %67, %cst_35 {dimension_numbers = #tpu.dot_dimension_numbers<[1], [0], [0], [1], [0, 0, 1, 1], [], []>} : vector<8x8xbf16>, vector<8x32xbf16>, vector<8x32xf32> -> vector<8x32xf32>
    %69 = arith.addf %63, %68 : vector<8x32xf32>
    %c0_36 = arith.constant 0 : index
    %c0_37 = arith.constant 0 : index
    %70 = vector.load %arg12[%c0_36, %c0_37] : memref<1x32xf32, #tpu.memory_space<vmem>>, vector<1x32xf32>
    %71 = vector.broadcast %70 : vector<1x32xf32> to vector<8x32xf32>
    %72 = arith.addf %69, %71 : vector<8x32xf32>
    %73 = arith.truncf %72 : vector<8x32xf32> to vector<8x32xbf16>
    %c0_38 = arith.constant 0 : index
    %c0_39 = arith.constant 0 : index
    %74 = vector.load %arg13[%c0_38, %c0_39] : memref<32x64xbf16, #tpu.memory_space<vmem>>, vector<32x64xbf16>
    %cst_40 = arith.constant dense<0.000000e+00> : vector<8x64xf32>
    %75 = tpu.matmul %73, %74, %cst_40 {dimension_numbers = #tpu.dot_dimension_numbers<[1], [0], [0], [1], [0, 0, 1, 1], [], []>} : vector<8x32xbf16>, vector<32x64xbf16>, vector<8x64xf32> -> vector<8x64xf32>
    %c0_41 = arith.constant 0 : index
    %c0_42 = arith.constant 0 : index
    %76 = vector.load %arg14[%c0_41, %c0_42] : memref<1x64xf32, #tpu.memory_space<vmem>>, vector<1x64xf32>
    %77 = vector.broadcast %76 : vector<1x64xf32> to vector<8x64xf32>
    %78 = arith.addf %75, %77 : vector<8x64xf32>
    %cst_43 = arith.constant 0.000000e+00 : f32
    %79 = vector.broadcast %cst_43 : f32 to vector<8x64xf32>
    %80 = arith.maximumf %78, %79 : vector<8x64xf32>
    %81 = arith.truncf %80 : vector<8x64xf32> to vector<8x64xbf16>
    %c0_44 = arith.constant 0 : index
    %c0_45 = arith.constant 0 : index
    %82 = vector.load %arg15[%c0_44, %c0_45] : memref<64x32xbf16, #tpu.memory_space<vmem>>, vector<64x32xbf16>
    %cst_46 = arith.constant dense<0.000000e+00> : vector<8x32xf32>
    %83 = tpu.matmul %81, %82, %cst_46 {dimension_numbers = #tpu.dot_dimension_numbers<[1], [0], [0], [1], [0, 0, 1, 1], [], []>} : vector<8x64xbf16>, vector<64x32xbf16>, vector<8x32xf32> -> vector<8x32xf32>
    %c0_47 = arith.constant 0 : index
    %c0_48 = arith.constant 0 : index
    %84 = vector.load %arg16[%c0_47, %c0_48] : memref<1x32xf32, #tpu.memory_space<vmem>>, vector<1x32xf32>
    %85 = vector.broadcast %84 : vector<1x32xf32> to vector<8x32xf32>
    %86 = arith.addf %83, %85 : vector<8x32xf32>
    %87 = arith.addf %86, %1 : vector<8x32xf32>
    %cst_49 = arith.constant dense<0.000000e+00> : vector<8xf32>
    %88 = vector.multi_reduction <add>, %87, %cst_49 [1] : vector<8x32xf32> to vector<8xf32>
    %89 = vector.shape_cast %88 : vector<8xf32> to vector<8x1xf32>
    %cst_50 = arith.constant 3.200000e+01 : f32
    %90 = vector.broadcast %cst_50 : f32 to vector<8x1xf32>
    %91 = arith.divf %89, %90 : vector<8x1xf32>
    %92 = vector.broadcast %91 : vector<8x1xf32> to vector<8x32xf32>
    %93 = arith.subf %87, %92 : vector<8x32xf32>
    %94 = arith.mulf %93, %93 : vector<8x32xf32>
    %cst_51 = arith.constant dense<0.000000e+00> : vector<8xf32>
    %95 = vector.multi_reduction <add>, %94, %cst_51 [1] : vector<8x32xf32> to vector<8xf32>
    %96 = vector.shape_cast %95 : vector<8xf32> to vector<8x1xf32>
    %cst_52 = arith.constant 3.200000e+01 : f32
    %97 = vector.broadcast %cst_52 : f32 to vector<8x1xf32>
    %98 = arith.divf %96, %97 : vector<8x1xf32>
    %cst_53 = arith.constant 9.99999996E-13 : f32
    %99 = vector.broadcast %cst_53 : f32 to vector<8x1xf32>
    %100 = arith.addf %98, %99 : vector<8x1xf32>
    %101 = math.rsqrt %100 : vector<8x1xf32>
    %102 = vector.broadcast %101 : vector<8x1xf32> to vector<8x32xf32>
    %103 = arith.mulf %93, %102 : vector<8x32xf32>
    %c0_54 = arith.constant 0 : index
    %c0_55 = arith.constant 0 : index
    %104 = vector.load %arg17[%c0_54, %c0_55] : memref<1x32xf32, #tpu.memory_space<vmem>>, vector<1x32xf32>
    %105 = vector.broadcast %104 : vector<1x32xf32> to vector<8x32xf32>
    %106 = arith.mulf %105, %103 : vector<8x32xf32>
    %c0_56 = arith.constant 0 : index
    %c0_57 = arith.constant 0 : index
    %107 = vector.load %arg18[%c0_56, %c0_57] : memref<1x32xf32, #tpu.memory_space<vmem>>, vector<1x32xf32>
    %108 = vector.broadcast %107 : vector<1x32xf32> to vector<8x32xf32>
    %109 = arith.addf %106, %108 : vector<8x32xf32>
    %c0_58 = arith.constant 0 : index
    %c0_59 = arith.constant 0 : index
    %c0_60 = arith.constant 0 : index
    %110 = vector.load %arg19[%c0_58, %c0_59, %c0_60] : memref<1x8x32xf32, #tpu.memory_space<vmem>>, vector<1x8x32xf32>
    %111 = vector.shape_cast %110 : vector<1x8x32xf32> to vector<8x32xf32>
    %112 = vector.shape_cast %109 : vector<8x32xf32> to vector<1x8x32xf32>
    tpu.vector_store %arg19[%c0_58, %c0_59, %c0_60], %112 {strides = array<i32>} : memref<1x8x32xf32, #tpu.memory_space<vmem>>, vector<1x8x32xf32>,
    return
  }
  func.func @transform_0(%arg0: i32, %arg1: i32) -> (i32, i32, i32) {
    %c0_i32 = arith.constant 0 : i32
    %c0_i32_0 = arith.constant 0 : i32
    return %arg0, %arg1, %c0_i32 : i32, i32, i32
  }
  func.func @transform_1(%arg0: i32, %arg1: i32) -> (i32, i32, i32) {
    %c0_i32 = arith.constant 0 : i32
    %c0_i32_0 = arith.constant 0 : i32
    %c0_i32_1 = arith.constant 0 : i32
    return %arg0, %c0_i32, %c0_i32_0 : i32, i32, i32
  }
  func.func @transform_2(%arg0: i32, %arg1: i32) -> (i32, i32, i32, i32) {
    %c0_i32 = arith.constant 0 : i32
    %c0_i32_0 = arith.constant 0 : i32
    %c0_i32_1 = arith.constant 0 : i32
    return %arg0, %c0_i32, %arg1, %c0_i32_0 : i32, i32, i32, i32
  }
  func.func @transform_3(%arg0: i32, %arg1: i32) -> (i32, i32) {
    %c0_i32 = arith.constant 0 : i32
    %c0_i32_0 = arith.constant 0 : i32
    %c0_i32_1 = arith.constant 0 : i32
    return %c0_i32, %c0_i32_0 : i32, i32
  }
  func.func @transform_4(%arg0: i32, %arg1: i32) -> (i32, i32) {
    %c0_i32 = arith.constant 0 : i32
    %c0_i32_0 = arith.constant 0 : i32
    %c0_i32_1 = arith.constant 0 : i32
    return %c0_i32, %c0_i32_0 : i32, i32
  }
  func.func @transform_5(%arg0: i32, %arg1: i32) -> (i32, i32) {
    %c0_i32 = arith.constant 0 : i32
    %c0_i32_0 = arith.constant 0 : i32
    %c0_i32_1 = arith.constant 0 : i32
    return %c0_i32, %c0_i32_0 : i32, i32
  }
  func.func @transform_6(%arg0: i32, %arg1: i32) -> (i32, i32) {
    %c0_i32 = arith.constant 0 : i32
    %c0_i32_0 = arith.constant 0 : i32
    %c0_i32_1 = arith.constant 0 : i32
    return %c0_i32, %c0_i32_0 : i32, i32
  }
  func.func @transform_7(%arg0: i32, %arg1: i32) -> (i32, i32) {
    %c0_i32 = arith.constant 0 : i32
    %c0_i32_0 = arith.constant 0 : i32
    %c0_i32_1 = arith.constant 0 : i32
    return %c0_i32, %c0_i32_0 : i32, i32
  }
  func.func @transform_8(%arg0: i32, %arg1: i32) -> (i32, i32) {
    %c0_i32 = arith.constant 0 : i32
    %c0_i32_0 = arith.constant 0 : i32
    %c0_i32_1 = arith.constant 0 : i32
    return %c0_i32, %c0_i32_0 : i32, i32
  }
  func.func @transform_9(%arg0: i32, %arg1: i32) -> (i32, i32, i32) {
    %c0_i32 = arith.constant 0 : i32
    %c0_i32_0 = arith.constant 0 : i32
    %c0_i32_1 = arith.constant 0 : i32
    %c0_i32_2 = arith.constant 0 : i32
    return %c0_i32, %c0_i32_0, %c0_i32_1 : i32, i32, i32
  }
  func.func @transform_10(%arg0: i32, %arg1: i32) -> (i32, i32) {
    %c0_i32 = arith.constant 0 : i32
    %c0_i32_0 = arith.constant 0 : i32
    %c0_i32_1 = arith.constant 0 : i32
    return %c0_i32, %c0_i32_0 : i32, i32
  }
  func.func @transform_11(%arg0: i32, %arg1: i32) -> (i32, i32) {
    %c0_i32 = arith.constant 0 : i32
    %c0_i32_0 = arith.constant 0 : i32
    %c0_i32_1 = arith.constant 0 : i32
    return %c0_i32, %c0_i32_0 : i32, i32
  }
  func.func @transform_12(%arg0: i32, %arg1: i32) -> (i32, i32) {
    %c0_i32 = arith.constant 0 : i32
    %c0_i32_0 = arith.constant 0 : i32
    %c0_i32_1 = arith.constant 0 : i32
    return %c0_i32, %c0_i32_0 : i32, i32
  }
  func.func @transform_13(%arg0: i32, %arg1: i32) -> (i32, i32) {
    %c0_i32 = arith.constant 0 : i32
    %c0_i32_0 = arith.constant 0 : i32
    %c0_i32_1 = arith.constant 0 : i32
    return %c0_i32, %c0_i32_0 : i32, i32
  }
  func.func @transform_14(%arg0: i32, %arg1: i32) -> (i32, i32) {
    %c0_i32 = arith.constant 0 : i32
    %c0_i32_0 = arith.constant 0 : i32
    %c0_i32_1 = arith.constant 0 : i32
    return %c0_i32, %c0_i32_0 : i32, i32
  }
  func.func @transform_15(%arg0: i32, %arg1: i32) -> (i32, i32) {
    %c0_i32 = arith.constant 0 : i32
    %c0_i32_0 = arith.constant 0 : i32
    %c0_i32_1 = arith.constant 0 : i32
    return %c0_i32, %c0_i32_0 : i32, i32
  }
  func.func @transform_16(%arg0: i32, %arg1: i32) -> (i32, i32) {
    %c0_i32 = arith.constant 0 : i32
    %c0_i32_0 = arith.constant 0 : i32
    %c0_i32_1 = arith.constant 0 : i32
    return %c0_i32, %c0_i32_0 : i32, i32
  }
  func.func @transform_17(%arg0: i32, %arg1: i32) -> (i32, i32, i32) {
    %c0_i32 = arith.constant 0 : i32
    %c0_i32_0 = arith.constant 0 : i32
    return %arg0, %arg1, %c0_i32 : i32, i32, i32
  }
}

</mosaic_0001>

<bundles_post_ra>
// kernel: tpu_custom_call.1
= control target key start
LH: loop header
LB: loop body
LE: loop exit
PB: predicated region body
PF: predicated region fallthrough
CT: control target
= control target key end

     0   :  { %s4307_s0 = inlined_call_operand.hbm [shape: f32[2,16,32], index: 0, kind: input, shape index: {}]   ;;  %s4308_s1 = inlined_call_operand.hbm [shape: bf16[2,16,32], index: 1, kind: input, shape index: {}]   ;;  %s4309_s2 = inlined_call_operand.hbm [shape: s8[2,1,16,16], index: 2, kind: input, shape index: {}]   ;;  %s4310_s3 = inlined_call_operand.hbm [shape: bf16[32,32], index: 3, kind: input, shape index: {}]   ;;  %s4311_s4 = inlined_call_operand.hbm [shape: f32[1,32], index: 4, kind: input, shape index: {}]   ;;  %s4312_s5 = inlined_call_operand.hbm [shape: bf16[32,32], index: 5, kind: input, shape index: {}]   ;;  %s4313_s6 = inlined_call_operand.hbm [shape: f32[1,32], index: 6, kind: input, shape index: {}]   ;;  %s4314_s7 = inlined_call_operand.hbm [shape: bf16[32,32], index: 7, kind: input, shape index: {}]   ;;  %s4315_s8 = inlined_call_operand.hbm [shape: f32[1,32], index: 8, kind: input, shape index: {}]   ;;  %s4316_s9 = inlined_call_operand.hbm [shape: bf16[4,8,32], index: 9, kind: input, shape index: {}]   ;;  %s4317_s10 = inlined_call_operand.hbm [shape: f32[1,32], index: 10, kind: input, shape index: {}]   ;;  %s4318_s11 = inlined_call_operand.hbm [shape: bf16[32,64], index: 11, kind: input, shape index: {}]   ;;  %s4319_s12 = inlined_call_operand.hbm [shape: f32[1,64], index: 12, kind: input, shape index: {}]   ;;  %s4320_s13 = inlined_call_operand.hbm [shape: bf16[64,32], index: 13, kind: input, shape index: {}]   ;;  %s4321_s14 = inlined_call_operand.hbm [shape: f32[1,32], index: 14, kind: input, shape index: {}]   ;;  %s4322_s15 = inlined_call_operand.hbm [shape: f32[1,32], index: 15, kind: input, shape index: {}]   ;;  %s4323_s16 = inlined_call_operand.hbm [shape: f32[1,32], index: 16, kind: input, shape index: {}]   ;;  %s4324_s17 = inlined_call_operand.hbm [shape: f32[2,16,32], index: 17, kind: output, shape index: {}]  }
   0x1   :  { %4354 = sst [smem:[#allocation50_spill]] %s4307_s0 }
   0x2   :  { %4355 = sst [smem:[#allocation51_spill]] %s4308_s1 }
   0x3   :  { %4356 = sst [smem:[#allocation52_spill]] %s4309_s2 }
   0x4   :  { %4357 = sst [smem:[#allocation53_spill]] %s4310_s3 }
   0x5   :  { %4358 = sst [smem:[#allocation54_spill]] %s4311_s4 }
   0x6   :  { %4359 = sst [smem:[#allocation55_spill]] %s4312_s5 }
   0x7   :  { %4360 = sst [smem:[#allocation56_spill]] %s4313_s6 }
   0x8   :  { %4361 = sst [smem:[#allocation57_spill]] %s4314_s7 }
   0x9   :  { %4362 = sst [smem:[#allocation58_spill]] %s4315_s8 }
   0xa   :  { %4363 = sst [smem:[#allocation59_spill]] %s4316_s9 }
   0xb   :  { %4364 = sst [smem:[#allocation60_spill]] %s4317_s10 }
   0xc   :  { %4365 = sst [smem:[#allocation61_spill]] %s4318_s11 }
   0xd   :  { %4366 = sst [smem:[#allocation62_spill]] %s4319_s12 }
   0xe   :  { %4367 = sst [smem:[#allocation63_spill]] %s4320_s13 }
   0xf   :  { %4368 = sst [smem:[#allocation64_spill]] %s4321_s14 }
  0x10   :  { %4369 = sst [smem:[#allocation65_spill]] %s4323_s16 }
  0x11   :  { %4370 = sst [smem:[#allocation66_spill]] %s4324_s17 }
  0x12   :  { %22 = vsyncpa [#allocation5], 0 }
  0x13   :  { %24 = vsyncpa [#allocation5 + $0x1], 0 }
  0x14   :  { %25 = vsyncpa [#allocation8], 0 }
  0x15   :  { %27 = vsyncpa [#allocation8 + $0x1], 0 }
  0x16   :  { %28 = vsyncpa [#allocation11], 0 }
  0x17   :  { %29 = vsyncpa [#allocation14], 0 }
  0x18   :  { %30 = vsyncpa [#allocation17], 0 }
  0x19   :  { %31 = vsyncpa [#allocation20], 0 }
  0x1a   :  { %32 = vsyncpa [#allocation23], 0 }
  0x1b   :  { %33 = vsyncpa [#allocation26], 0 }
  0x1c   :  { %34 = vsyncpa [#allocation29], 0 }
  0x1d   :  { %35 = vsyncpa [#allocation6], 0 }
  0x1e   :  { %37 = vsyncpa [#allocation6 + $0x1], 0  ;;  %s3509_s24 = smov 0   ;;  %s3511_s25 = smov 0  }
  0x1f   :  { %s3513_s26 = smov 0   ;;  %s3515_s27 = smov 0  }
  0x20   :  { %s3517_s28 = smov 0   ;;  %s3519_s29 = smov 0  }
  0x21   :  { %s3521_s0 = smov 0   ;;  %s3523_s30 = smov 0  }
  0x22   :  { %s3525_s18 = smov 0   ;;  %s3527_s19 = smov 0  }
  0x23   :  { %s3529_s1 = smov 0  }
  0x24 LB: > { %4371 = sst [smem:[#allocation43_spill]] %s3359_s27  ;;  %s3565_s20 = sadd.s32 4294967295, %s3387_s1   ;;  %s3387_s1 = sphi %s3529_s1, %s43_s1   ;;  %s3383_s19 = sphi %s3527_s19, %s4459_s19   ;;  %s3379_s18 = sphi %s3525_s18, %s4461_s18   ;;  %s3375_s30 = sphi %s3523_s30, %s4458_s30   ;;  %s3371_s0 = sphi %s3521_s0, %s4457_s0   ;;  %s3367_s29 = sphi %s3519_s29, %s4456_s29   ;;  %s3363_s28 = sphi %s3517_s28, %s4455_s28   ;;  %s3359_s27 = sphi %s3515_s27, %s4449_s27   ;;  %s3355_s26 = sphi %s3513_s26, %s4454_s26   ;;  %s3351_s25 = sphi %s3511_s25, %s4453_s25   ;;  %s3347_s24 = sphi %s3509_s24, %s4452_s24  }
  0x25   : > { %4372 = sst [smem:[#allocation44_spill]] %s3363_s28  ;;  %p2205_p0 = scmp.ge.s32.totalorder %s3387_s1, 1 }
  0x26   : > { %4373 = sst [smem:[#allocation45_spill]] %s3367_s29  ;;  %p4338_p1 = scmp.eq.s32.totalorder %s3565_s20, 0 }
  0x27   : > { %4374 = sst [smem:[#allocation46_spill]] %s3371_s0  ;;  %p464_p2 = scmp.lt.s32.totalorder %s3387_s1, 5 }
  0x28   : > { %4375 = sst [smem:[#allocation47_spill]] %s3375_s30  ;;  %s3389_s22 = smov [#allocation10]  }
  0x29   : > { %4376 = sst [smem:[#allocation48_spill]] %s3379_s18  ;;  %p3570_p3 = pnand %p2205_p0, %p464_p2 }
  0x2a   : > { %s476_s23 = sshll.u32 %s3389_s22, 4  ;;  %s3390_s30 = smov [#allocation13]   ;;  %s3574_s23 = int_to_ptr.vmem [resolvable:$true] %s476_s23 }
  0x2b   : > { %s4377_s21 = scalar_select %p3570_p3, 1, 0 }
  0x2c   : > { %p2515_p4 = pneg %p3570_p3  ;;  %s500_s0 = sshll.u32 %s3390_s30, 4  ;;  %s3584_s0 = int_to_ptr.vmem [resolvable:$true] %s500_s0 }
  0x2d   : > { %4378 = sst [smem:[#allocation49_spill]] %s4377_s21  ;;  %s3391_s2 = smov [#allocation16]  }
  0x2e   : > { %p3580_p5 = pnand %p2515_p4, %p4338_p1  ;;  %s3586_s27 = sshll.u32 %s3391_s2, 4  ;;  %s525_s27 = int_to_ptr.vmem [resolvable:$true] %s3586_s27 }
  0x2f   : > { %s4380_s3 = sld [smem:[#allocation53_spill]] }
  0x30   : > { %s4379_s17 = scalar_select %p3580_p5, 1, 0 }
  0x31   : > { %p3596_p7 = pneg %p3580_p5 }
  0x35   : > { %s2747_s22 = scalar_lea.hbm %s4380_s3, 256 }
  0x36   : > { %p2748_p6 = scmp.ne.s32.totalorder %s4380_s3, %s2747_s22  ;;  %p2754_p10 = scmp.lt.u32.totalorder %s2747_s22, %s4380_s3 }
  0x38   : > { %p2750_p8 = pnand %p3596_p7, %p2748_p6 }
  0x3a   : > { %p2751_p9 = pneg %p2750_p8 }
  0x3c   : > { %p2756_p11 = pnand %p2754_p10, %p2751_p9 }
  0x3e   : > { %2759 = shalt.err (!%p2756_p11)
}
  0x3f   : > { %s2760_s28 = scalar_lea.vmem %s3574_s23, 256  ;;  %p2768_p2 = scmp.lt.s32.totalorder %s3574_s23, %s3574_s23 }
  0x40   : > { %p2761_p12 = scmp.ne.s32.totalorder %s3574_s23, %s2760_s28  ;;  %p2769_p4 = scmp.lt.s32.totalorder %s2760_s28, %s2760_s28 }
  0x42   : > { %p2763_p13 = pnand %p2761_p12, %p3596_p7  ;;  %p2770_p6 = por %p2769_p4, %p2768_p2 }
  0x44   : > { %p2764_p0 = pneg %p2763_p13 }
  0x46   : > { %p2771_p8 = pnand %p2770_p6, %p2764_p0 }
  0x48   : > { %2774 = shalt.err (!%p2771_p8)
}
  0x49   : > { %s4340_s29 = smov 64   ;;  %s3393_s18 = smov 4  }
  0x4a   : > { %2518 = dma.hbm_to_vmem [thread:$0]  (!%p3580_p5), %s4380_s3, 256, %s3574_s23, [#allocation11], %s4340_s29, %s4340_s29, %s3393_s18  }
  0x4b   : > { %s4382_s5 = sld [smem:[#allocation55_spill]] }
  0x51   : > { %s2775_s28 = scalar_lea.hbm %s4382_s5, 256 }
  0x52   : > { %p2776_p9 = scmp.ne.s32.totalorder %s4382_s5, %s2775_s28  ;;  %p2782_p12 = scmp.lt.u32.totalorder %s2775_s28, %s4382_s5 }
  0x54   : > { %p2778_p10 = pnand %p2776_p9, %p3596_p7 }
  0x56   : > { %p2779_p11 = pneg %p2778_p10 }
  0x58   : > { %p2784_p13 = pnand %p2782_p12, %p2779_p11 }
  0x5a   : > { %2787 = shalt.err (!%p2784_p13)
}
  0x5b   : > { %s2788_s23 = scalar_lea.vmem %s3584_s0, 256  ;;  %p2796_p6 = scmp.lt.s32.totalorder %s3584_s0, %s3584_s0 }
  0x5c   : > { %p2789_p0 = scmp.ne.s32.totalorder %s3584_s0, %s2788_s23  ;;  %p2797_p8 = scmp.lt.s32.totalorder %s2788_s23, %s2788_s23 }
  0x5e   : > { %p2791_p2 = pnand %p2789_p0, %p3596_p7  ;;  %p2798_p9 = por %p2797_p8, %p2796_p6 }
  0x60   : > { %p2792_p4 = pneg %p2791_p2 }
  0x62   : > { %p2799_p10 = pnand %p2798_p9, %p2792_p4 }
  0x64   : > { %2802 = shalt.err (!%p2799_p10)
}
  0x65   : > { %2524 = dma.hbm_to_vmem [thread:$0]  (!%p3580_p5), %s4382_s5, 256, %s3584_s0, [#allocation14], %s4340_s29, %s4340_s29, %s3393_s18  }
  0x66   : > { %s4383_s7 = sld [smem:[#allocation57_spill]] }
  0x6c   : > { %s2803_s21 = scalar_lea.hbm %s4383_s7, 256 }
  0x6d   : > { %p2804_p11 = scmp.ne.s32.totalorder %s4383_s7, %s2803_s21  ;;  %p2810_p0 = scmp.lt.u32.totalorder %s2803_s21, %s4383_s7 }
  0x6f   : > { %p2806_p12 = pnand %p2804_p11, %p3596_p7 }
  0x71   : > { %p2807_p13 = pneg %p2806_p12 }
  0x73   : > { %p2812_p2 = pnand %p2810_p0, %p2807_p13 }
  0x75   : > { %2815 = shalt.err (!%p2812_p2)
}
  0x76   : > { %s2816_s23 = scalar_lea.vmem %s525_s27, 256  ;;  %p2824_p9 = scmp.lt.s32.totalorder %s525_s27, %s525_s27 }
  0x77   : > { %p2817_p4 = scmp.ne.s32.totalorder %s525_s27, %s2816_s23  ;;  %p2825_p10 = scmp.lt.s32.totalorder %s2816_s23, %s2816_s23 }
  0x79   : > { %p2819_p6 = pnand %p2817_p4, %p3596_p7  ;;  %p2826_p1 = por %p2825_p10, %p2824_p9 }
  0x7b   : > { %p2820_p8 = pneg %p2819_p6 }
  0x7d   : > { %p2827_p3 = pnand %p2826_p1, %p2820_p8 }
  0x7f   : > { %2830 = shalt.err (!%p2827_p3)
}
  0x80   : > { %2530 = dma.hbm_to_vmem [thread:$0]  (!%p3580_p5), %s4383_s7, 256, %s525_s27, [#allocation17], %s4340_s29, %s4340_s29, %s3393_s18  }
  0x81   : > { %s3394_s10 = smov [#allocation19]   ;;  %s3395_s14 = smov [#allocation22]  }
  0x82   : > { %s548_s12 = sshll.u32 %s3394_s10, 4  ;;  %s572_s21 = sshll.u32 %s3395_s14, 4  ;;  %s549_s12 = int_to_ptr.vmem [resolvable:$true] %s548_s12  ;;  %s573_s21 = int_to_ptr.vmem [resolvable:$true] %s572_s21 }
  0x83   : > { %s4384_s9 = sld [smem:[#allocation59_spill]] }
  0x89   : > { %s2831_s2 = scalar_lea.hbm %s4384_s9, 256 }
  0x8a   : > { %p2832_p1 = scmp.ne.s32.totalorder %s4384_s9, %s2831_s2  ;;  %p2838_p12 = scmp.lt.u32.totalorder %s2831_s2, %s4384_s9 }
  0x8c   : > { %p2834_p3 = pnand %p2832_p1, %p3596_p7 }
  0x8e   : > { %p2835_p11 = pneg %p2834_p3 }
  0x90   : > { %p2840_p13 = pnand %p2838_p12, %p2835_p11 }
  0x92   : > { %2843 = shalt.err (!%p2840_p13)
}
  0x93   : > { %s2844_s27 = scalar_lea.vmem %s549_s12, 256  ;;  %p2852_p6 = scmp.lt.s32.totalorder %s549_s12, %s549_s12 }
  0x94   : > { %p2845_p0 = scmp.ne.s32.totalorder %s549_s12, %s2844_s27  ;;  %p2853_p8 = scmp.lt.s32.totalorder %s2844_s27, %s2844_s27 }
  0x96   : > { %p2847_p2 = pnand %p2845_p0, %p3596_p7  ;;  %p2854_p9 = por %p2853_p8, %p2852_p6 }
  0x98   : > { %p2848_p4 = pneg %p2847_p2 }
  0x9a   : > { %p2855_p10 = pnand %p2854_p9, %p2848_p4 }
  0x9c   : > { %2858 = shalt.err (!%p2855_p10)
}
  0x9d   : > { %2536 = dma.hbm_to_vmem [thread:$0]  (!%p3580_p5), %s4384_s9, 256, %s549_s12, [#allocation20], %s4340_s29, %s4340_s29, %s3393_s18  }
  0x9e   : > { %s4385_s11 = sld [smem:[#allocation61_spill]] }
  0xa4   : > { %s2859_s22 = scalar_lea.hbm %s4385_s11, 256 }
  0xa5   : > { %p2860_p1 = scmp.ne.s32.totalorder %s4385_s11, %s2859_s22  ;;  %p2866_p12 = scmp.lt.u32.totalorder %s2859_s22, %s4385_s11 }
  0xa7   : > { %p2862_p3 = pnand %p2860_p1, %p3596_p7 }
  0xa9   : > { %p2863_p11 = pneg %p2862_p3 }
  0xab   : > { %p2868_p13 = pnand %p2866_p12, %p2863_p11 }
  0xad   : > { %2871 = shalt.err (!%p2868_p13)
}
  0xae   : > { %s2872_s0 = scalar_lea.vmem %s573_s21, 256  ;;  %p2880_p6 = scmp.lt.s32.totalorder %s573_s21, %s573_s21 }
  0xaf   : > { %p2873_p0 = scmp.ne.s32.totalorder %s573_s21, %s2872_s0  ;;  %p2881_p8 = scmp.lt.s32.totalorder %s2872_s0, %s2872_s0 }
  0xb1   : > { %p2875_p2 = pnand %p2873_p0, %p3596_p7  ;;  %p2882_p9 = por %p2881_p8, %p2880_p6 }
  0xb3   : > { %p2876_p4 = pneg %p2875_p2 }
  0xb5   : > { %p2883_p10 = pnand %p2882_p9, %p2876_p4 }
  0xb7   : > { %2886 = shalt.err (!%p2883_p10)
}
  0xb8   : > { %2542 = dma.hbm_to_vmem [thread:$0]  (!%p3580_p5), %s4385_s11, 256, %s573_s21, [#allocation23], %s4340_s29, %s4340_s29, %s3393_s18  }
  0xb9   : > { %s3396_s3 = smov [#allocation25]   ;;  %s3397_s10 = smov [#allocation28]  }
  0xba   : > { %s596_s8 = sshll.u32 %s3396_s3, 4  ;;  %s621_s14 = sshll.u32 %s3397_s10, 4  ;;  %s597_s8 = int_to_ptr.vmem [resolvable:$true] %s596_s8  ;;  %s622_s14 = int_to_ptr.vmem [resolvable:$true] %s621_s14 }
  0xbb   : > { %s4386_s13 = sld [smem:[#allocation63_spill]] }
  0xc1   : > { %s2887_s2 = scalar_lea.hbm %s4386_s13, 512 }
  0xc2   : > { %p2888_p1 = scmp.ne.s32.totalorder %s4386_s13, %s2887_s2  ;;  %p2894_p12 = scmp.lt.u32.totalorder %s2887_s2, %s4386_s13 }
  0xc4   : > { %p2890_p3 = pnand %p2888_p1, %p3596_p7 }
  0xc6   : > { %p2891_p11 = pneg %p2890_p3 }
  0xc8   : > { %p2896_p13 = pnand %p2894_p12, %p2891_p11 }
  0xca   : > { %2899 = shalt.err (!%p2896_p13)
}
  0xcb   : > { %s2900_s21 = scalar_lea.vmem %s597_s8, 512  ;;  %p2908_p6 = scmp.lt.s32.totalorder %s597_s8, %s597_s8 }
  0xcc   : > { %p2901_p0 = scmp.ne.s32.totalorder %s597_s8, %s2900_s21  ;;  %p2909_p8 = scmp.lt.s32.totalorder %s2900_s21, %s2900_s21 }
  0xce   : > { %p2903_p2 = pnand %p2901_p0, %p3596_p7  ;;  %p2910_p9 = por %p2909_p8, %p2908_p6 }
  0xd0   : > { %p2904_p4 = pneg %p2903_p2 }
  0xd2   : > { %p2911_p10 = pnand %p2910_p9, %p2904_p4 }
  0xd4   : > { %2914 = shalt.err (!%p2911_p10)
}
  0xd5   : > { %2548 = dma.hbm_to_vmem [thread:$0]  (!%p3580_p5), %s4386_s13, 512, %s597_s8, [#allocation26], %s4340_s29, %s4340_s29, %s3393_s18  }
  0xd6   : > { %s2915_s30 = scalar_lea.hbm %s4322_s15, 16 }
  0xd7   : > { %p2916_p1 = scmp.ne.s32.totalorder %s4322_s15, %s2915_s30  ;;  %p2922_p12 = scmp.lt.u32.totalorder %s2915_s30, %s4322_s15 }
  0xd9   : > { %p2918_p3 = pnand %p2916_p1, %p3596_p7 }
  0xdb   : > { %p2919_p11 = pneg %p2918_p3 }
  0xdd   : > { %p2924_p13 = pnand %p2922_p12, %p2919_p11 }
  0xdf   : > { %2927 = shalt.err (!%p2924_p13)
}
  0xe0   : > { %s2928_s12 = scalar_lea.vmem %s622_s14, 16  ;;  %s2935_s8 = scalar_lea.vmem %s622_s14, 32 }
  0xe1   : > { %p2929_p0 = scmp.ne.s32.totalorder %s622_s14, %s2928_s12  ;;  %p2936_p6 = scmp.lt.s32.totalorder %s622_s14, %s622_s14 }
  0xe2   : > { %p2937_p8 = scmp.lt.s32.totalorder %s2935_s8, %s2928_s12 }
  0xe3   : > { %p2931_p2 = pnand %p2929_p0, %p3596_p7 }
  0xe4   : > { %p2938_p9 = por %p2937_p8, %p2936_p6 }
  0xe5   : > { %p2932_p4 = pneg %p2931_p2 }
  0xe7   : > { %p2939_p10 = pnand %p2938_p9, %p2932_p4 }
  0xe9   : > { %2942 = shalt.err (!%p2939_p10)
}
  0xea   : > { %2554 = dma.hbm_to_vmem [thread:$0]  (!%p3580_p5), %s4322_s15, 16, %s622_s14, [#allocation29]  }
  0xeb   : > { %p4342_p1 = scmp.eq.s32.totalorder %s3387_s1, 0  ;;  %p97_p3 = scmp.ne.s32.totalorder %s3355_s26, %s3351_s25 }
  0xec   : > { %p103_p11 = scmp.ne.s32.totalorder %s3351_s25, %s3347_s24  ;;  %p4341_p12 = scmp.lt.s32.totalorder %s3387_s1, 4 }
  0xed   : > { %p99_p13 = por %p97_p3, %p4342_p1  ;;  %s663_s10 = sand.u32 1, %s3387_s1  }
  0xee   : > { %p4387_p0 = scmp.eq.s32.totalorder %s3565_s20, 0  ;;  %s665_s30 = sand.u32 1, %s3355_s26  }
  0xef   : > { %s2293_s2 = sshll.u32 %s3383_s19, 7  ;;  %s2224_s28 = sshll.u32 %s665_s30, 3 }
  0xf0   : > { %p3761_p2 = por %p103_p11, %p4387_p0  ;;  %s4389_s12 = sld [smem:[#allocation51_spill]] }
  0xf1   : > { %p3774_p4 = pnand %p4341_p12, %p99_p13  ;;  %s667_s8 = scalar_lea.vmem [#allocation7], %s2224_s28 }
  0xf2   : > { %s4388_s22 = scalar_select %p3761_p2, 1, 0 }
  0xf3   : > { %s674_s21 = sshll.u32 %s667_s8, 4  ;;  %s3780_s27 = scalar_lea.sflag [#allocation8], %s663_s10  ;;  %s3778_s21 = int_to_ptr.vmem [resolvable:$true] %s674_s21 }
  0xf4   : > { %p2945_p8 = pneg %p3774_p4 }
  0xf6   : > { %s3770_s14 = scalar_lea.hbm %s4389_s12, %s2293_s2  ;;  %s2948_s0 = scalar_lea.hbm %s4389_s12, 256 }
  0xf7   : > { %s2943_s30 = scalar_lea.hbm %s3770_s14, 128  ;;  %p2949_p3 = scmp.lt.u32.totalorder %s3770_s14, %s4389_s12 }
  0xf8   : > { %p2944_p6 = scmp.ne.s32.totalorder %s3770_s14, %s2943_s30  ;;  %p2950_p11 = scmp.lt.u32.totalorder %s2948_s0, %s2943_s30 }
  0xf9   : > { %p2952_p0 = scmp.lt.u32.totalorder %s2943_s30, %s3770_s14 }
  0xfa   : > { %p2946_p9 = pnand %p2945_p8, %p2944_p6  ;;  %p2951_p13 = por %p2950_p11, %p2949_p3 }
  0xfc   : > { %p2947_p10 = pneg %p2946_p9  ;;  %p2953_p12 = por %p2952_p0, %p2951_p13 }
  0xfe   : > { %p2954_p1 = pnand %p2953_p12, %p2947_p10 }
 0x100   : > { %2957 = shalt.err (!%p2954_p1)
}
 0x101   : > { %s2958_s10 = scalar_lea.vmem %s3778_s21, 128  ;;  %s3398_s28 = smov [#allocation7]  }
 0x102   : > { %p2959_p6 = scmp.ne.s32.totalorder %s3778_s21, %s2958_s10  ;;  %s2963_s8 = sshll.u32 %s3398_s28, 4  ;;  %s2964_s8 = int_to_ptr.vmem [resolvable:$false] %s2963_s8 }
 0x103   : > { %s2965_s29 = scalar_lea.vmem %s2964_s8, 256  ;;  %p2966_p5 = scmp.lt.s32.totalorder %s3778_s21, %s2964_s8 }
 0x104   : > { %p2961_p9 = pnand %p2959_p6, %p2945_p8  ;;  %p2967_p3 = scmp.lt.s32.totalorder %s2965_s29, %s2958_s10 }
 0x106   : > { %p2962_p2 = pneg %p2961_p9  ;;  %p2968_p11 = por %p2967_p3, %p2966_p5 }
 0x108   : > { %p2969_p13 = pnand %p2968_p11, %p2962_p2 }
 0x10a   : > { %2972 = shalt.err (!%p2969_p13)
}
 0x10b   : > { %s4391_s3 = smov 64   ;;  %s3399_s30 = smov [#allocation12]  }
 0x10c   : > { %2564 = dma.hbm_to_vmem [thread:$0]  (!%p3774_p4), %s3770_s14, 128, %s3778_s21, %s3780_s27, %s4391_s3, %s4391_s3, %s3393_s18  }
 0x10d   : > { %s490_s2 = sshll.u32 %s3399_s30, 4  ;;  %s3400_s23 = smov [#allocation15]   ;;  %s491_s2 = int_to_ptr.vmem [resolvable:$true] %s490_s2 }
 0x10e   : > { %s514_s0 = sshll.u32 %s3400_s23, 4  ;;  %s4392_s4 = sld [smem:[#allocation54_spill]]  ;;  %s515_s0 = int_to_ptr.vmem [resolvable:$true] %s514_s0 }
 0x114   : > { %s2973_s8 = scalar_lea.hbm %s4392_s4, 16 }
 0x115   : > { %p2974_p5 = scmp.ne.s32.totalorder %s4392_s4, %s2973_s8  ;;  %p2980_p2 = scmp.lt.u32.totalorder %s2973_s8, %s4392_s4 }
 0x117   : > { %p2976_p1 = pnand %p2974_p5, %p3596_p7 }
 0x119   : > { %p2977_p12 = pneg %p2976_p1 }
 0x11b   : > { %p2982_p4 = pnand %p2980_p2, %p2977_p12 }
 0x11d   : > { %2985 = shalt.err (!%p2982_p4)
}
 0x11e   : > { %s2986_s18 = scalar_lea.vmem %s491_s2, 16  ;;  %s2993_s14 = scalar_lea.vmem %s491_s2, 32 }
 0x11f   : > { %p2987_p8 = scmp.ne.s32.totalorder %s491_s2, %s2986_s18  ;;  %p2994_p6 = scmp.lt.s32.totalorder %s491_s2, %s491_s2 }
 0x120   : > { %p2995_p9 = scmp.lt.s32.totalorder %s2993_s14, %s2986_s18 }
 0x121   : > { %p2989_p10 = pnand %p2987_p8, %p3596_p7 }
 0x122   : > { %p2996_p3 = por %p2995_p9, %p2994_p6 }
 0x123   : > { %p2990_p0 = pneg %p2989_p10 }
 0x125   : > { %p2997_p11 = pnand %p2996_p3, %p2990_p0 }
 0x127   : > { %3000 = shalt.err (!%p2997_p11)
}
 0x128   : > { %p4393_p13 = scmp.ne.s32.totalorder %s4379_s17, 0  ;;  %s4394_s6 = sld [smem:[#allocation56_spill]] }
 0x12a   : > { %2521 = dma.hbm_to_vmem [thread:$0]  (!%p4393_p13), %s4392_s4, 16, %s491_s2, [#allocation11]  }
 0x12e   : > { %s3001_s30 = scalar_lea.hbm %s4394_s6, 16 }
 0x12f   : > { %p3002_p5 = scmp.ne.s32.totalorder %s4394_s6, %s3001_s30  ;;  %p3008_p2 = scmp.lt.u32.totalorder %s3001_s30, %s4394_s6 }
 0x131   : > { %p3004_p1 = pnand %p3002_p5, %p3596_p7 }
 0x133   : > { %p3005_p12 = pneg %p3004_p1 }
 0x135   : > { %p3010_p4 = pnand %p3008_p2, %p3005_p12 }
 0x137   : > { %3013 = shalt.err (!%p3010_p4)
}
 0x138   : > { %s3014_s29 = scalar_lea.vmem %s515_s0, 16  ;;  %s3021_s2 = scalar_lea.vmem %s515_s0, 32 }
 0x139   : > { %p3015_p8 = scmp.ne.s32.totalorder %s515_s0, %s3014_s29  ;;  %p3022_p6 = scmp.lt.s32.totalorder %s515_s0, %s515_s0 }
 0x13a   : > { %p3023_p9 = scmp.lt.s32.totalorder %s3021_s2, %s3014_s29 }
 0x13b   : > { %p3017_p10 = pnand %p3015_p8, %p3596_p7 }
 0x13c   : > { %p3024_p3 = por %p3023_p9, %p3022_p6 }
 0x13d   : > { %p3018_p0 = pneg %p3017_p10 }
 0x13f   : > { %p3025_p11 = pnand %p3024_p3, %p3018_p0 }
 0x141   : > { %3028 = shalt.err (!%p3025_p11)
}
 0x142   : > { %2527 = dma.hbm_to_vmem [thread:$0]  (!%p4393_p13), %s4394_s6, 16, %s515_s0, [#allocation14]  }
 0x143   : > { %s3401_s14 = smov [#allocation18]   ;;  %s3402_s21 = smov [#allocation21]  }
 0x144   : > { %s538_s5 = sshll.u32 %s3401_s14, 4  ;;  %s562_s7 = sshll.u32 %s3402_s21, 4  ;;  %s539_s5 = int_to_ptr.vmem [resolvable:$true] %s538_s5  ;;  %s563_s7 = int_to_ptr.vmem [resolvable:$true] %s562_s7 }
 0x145   : > { %s4395_s23 = sld [smem:[#allocation58_spill]] }
 0x14b   : > { %s3029_s28 = scalar_lea.hbm %s4395_s23, 16 }
 0x14c   : > { %p3030_p5 = scmp.ne.s32.totalorder %s4395_s23, %s3029_s28  ;;  %p3036_p2 = scmp.lt.u32.totalorder %s3029_s28, %s4395_s23 }
 0x14e   : > { %p3032_p1 = pnand %p3030_p5, %p3596_p7 }
 0x150   : > { %p3033_p12 = pneg %p3032_p1 }
 0x152   : > { %p3038_p4 = pnand %p3036_p2, %p3033_p12 }
 0x154   : > { %3041 = shalt.err (!%p3038_p4)
}
 0x155   : > { %s3042_s0 = scalar_lea.vmem %s539_s5, 16  ;;  %s3049_s24 = scalar_lea.vmem %s539_s5, 32 }
 0x156   : > { %p3043_p8 = scmp.ne.s32.totalorder %s539_s5, %s3042_s0  ;;  %p3050_p6 = scmp.lt.s32.totalorder %s539_s5, %s539_s5 }
 0x157   : > { %p3051_p9 = scmp.lt.s32.totalorder %s3049_s24, %s3042_s0 }
 0x158   : > { %p3045_p10 = pnand %p3043_p8, %p3596_p7 }
 0x159   : > { %p3052_p3 = por %p3051_p9, %p3050_p6 }
 0x15a   : > { %p3046_p0 = pneg %p3045_p10 }
 0x15c   : > { %p3053_p11 = pnand %p3052_p3, %p3046_p0 }
 0x15e   : > { %3056 = shalt.err (!%p3053_p11)
}
 0x15f   : > { %2533 = dma.hbm_to_vmem [thread:$0]  (!%p4393_p13), %s4395_s23, 16, %s539_s5, [#allocation17]  }
 0x160   : > { %s4396_s30 = sld [smem:[#allocation60_spill]] }
 0x166   : > { %s4397_s10 = smov %s4396_s30  ;;  %s3057_s28 = scalar_lea.hbm %s4396_s30, 16 }
 0x167   : > { %p3058_p5 = scmp.ne.s32.totalorder %s4397_s10, %s3057_s28  ;;  %p3064_p2 = scmp.lt.u32.totalorder %s3057_s28, %s4397_s10 }
 0x169   : > { %p3060_p1 = pnand %p3058_p5, %p3596_p7 }
 0x16b   : > { %p3061_p12 = pneg %p3060_p1 }
 0x16d   : > { %p3066_p4 = pnand %p3064_p2, %p3061_p12 }
 0x16f   : > { %3069 = shalt.err (!%p3066_p4)
}
 0x170   : > { %s3070_s24 = scalar_lea.vmem %s563_s7, 16  ;;  %s3077_s5 = scalar_lea.vmem %s563_s7, 32 }
 0x171   : > { %p3071_p8 = scmp.ne.s32.totalorder %s563_s7, %s3070_s24  ;;  %p3078_p6 = scmp.lt.s32.totalorder %s563_s7, %s563_s7 }
 0x172   : > { %p3079_p9 = scmp.lt.s32.totalorder %s3077_s5, %s3070_s24 }
 0x173   : > { %p3073_p10 = pnand %p3071_p8, %p3596_p7 }
 0x174   : > { %p3080_p3 = por %p3079_p9, %p3078_p6 }
 0x175   : > { %p3074_p0 = pneg %p3073_p10 }
 0x177   : > { %p3081_p11 = pnand %p3080_p3, %p3074_p0 }
 0x179   : > { %3084 = shalt.err (!%p3081_p11)
}
 0x17a   : > { %2539 = dma.hbm_to_vmem [thread:$0]  (!%p4393_p13), %s4397_s10, 16, %s563_s7, [#allocation20]  }
 0x17b   : > { %s3403_s21 = smov [#allocation24]   ;;  %s3404_s30 = smov [#allocation27]  }
 0x17c   : > { %s586_s3 = sshll.u32 %s3403_s21, 4  ;;  %s610_s28 = sshll.u32 %s3404_s30, 4  ;;  %s587_s3 = int_to_ptr.vmem [resolvable:$true] %s586_s3  ;;  %s611_s28 = int_to_ptr.vmem [resolvable:$true] %s610_s28 }
 0x17d   : > { %s4398_s2 = sld [smem:[#allocation62_spill]] }
 0x183   : > { %s3085_s0 = scalar_lea.hbm %s4398_s2, 16 }
 0x184   : > { %p3086_p5 = scmp.ne.s32.totalorder %s4398_s2, %s3085_s0  ;;  %p3092_p2 = scmp.lt.u32.totalorder %s3085_s0, %s4398_s2 }
 0x186   : > { %p3088_p1 = pnand %p3086_p5, %p3596_p7 }
 0x188   : > { %p3089_p12 = pneg %p3088_p1 }
 0x18a   : > { %p3094_p4 = pnand %p3092_p2, %p3089_p12 }
 0x18c   : > { %3097 = shalt.err (!%p3094_p4)
}
 0x18d   : > { %s3098_s7 = scalar_lea.vmem %s587_s3, 16  ;;  %s3105_s14 = scalar_lea.vmem %s587_s3, 32 }
 0x18e   : > { %p3099_p8 = scmp.ne.s32.totalorder %s587_s3, %s3098_s7  ;;  %p3106_p6 = scmp.lt.s32.totalorder %s587_s3, %s587_s3 }
 0x18f   : > { %p3107_p9 = scmp.lt.s32.totalorder %s3105_s14, %s3098_s7 }
 0x190   : > { %p3101_p10 = pnand %p3099_p8, %p3596_p7 }
 0x191   : > { %p3108_p3 = por %p3107_p9, %p3106_p6 }
 0x192   : > { %p3102_p0 = pneg %p3101_p10 }
 0x194   : > { %p3109_p11 = pnand %p3108_p3, %p3102_p0 }
 0x196   : > { %3112 = shalt.err (!%p3109_p11)
}
 0x197   : > { %2545 = dma.hbm_to_vmem [thread:$0]  (!%p4393_p13), %s4398_s2, 16, %s587_s3, [#allocation23]  }
 0x198   : > { %s4399_s29 = sld [smem:[#allocation64_spill]] }
 0x19e   : > { %s4400_s5 = smov %s4399_s29  ;;  %s3113_s0 = scalar_lea.hbm %s4399_s29, 16 }
 0x19f   : > { %p3114_p5 = scmp.ne.s32.totalorder %s4400_s5, %s3113_s0  ;;  %p3120_p2 = scmp.lt.u32.totalorder %s3113_s0, %s4400_s5 }
 0x1a1   : > { %p3116_p1 = pnand %p3114_p5, %p3596_p7 }
 0x1a3   : > { %p3117_p12 = pneg %p3116_p1 }
 0x1a5   : > { %p3122_p4 = pnand %p3120_p2, %p3117_p12 }
 0x1a7   : > { %3125 = shalt.err (!%p3122_p4)
}
 0x1a8   : > { %s3126_s21 = scalar_lea.vmem %s611_s28, 16  ;;  %s3133_s3 = scalar_lea.vmem %s611_s28, 32 }
 0x1a9   : > { %p3127_p8 = scmp.ne.s32.totalorder %s611_s28, %s3126_s21  ;;  %p3134_p6 = scmp.lt.s32.totalorder %s611_s28, %s611_s28 }
 0x1aa   : > { %p3135_p9 = scmp.lt.s32.totalorder %s3133_s3, %s3126_s21 }
 0x1ab   : > { %p3129_p10 = pnand %p3127_p8, %p3596_p7 }
 0x1ac   : > { %p3136_p3 = por %p3135_p9, %p3134_p6 }
 0x1ad   : > { %p3130_p0 = pneg %p3129_p10 }
 0x1af   : > { %p3137_p11 = pnand %p3136_p3, %p3130_p0 }
 0x1b1   : > { %3140 = shalt.err (!%p3137_p11)
}
 0x1b2   : > { %2551 = dma.hbm_to_vmem [thread:$0]  (!%p4393_p13), %s4400_s5, 16, %s611_s28, [#allocation26]  }
 0x1b3   : > { %s3405_s8 = smov [#allocation30]   ;;  %s4401_s18 = sld [smem:[#allocation65_spill]] }
 0x1b4   : > { %s632_s29 = sshll.u32 %s3405_s8, 4  ;;  %s633_s29 = int_to_ptr.vmem [resolvable:$true] %s632_s29 }
 0x1b9   : > { %s4402_s7 = smov %s4401_s18  ;;  %s3141_s14 = scalar_lea.hbm %s4401_s18, 16 }
 0x1ba   : > { %p3142_p5 = scmp.ne.s32.totalorder %s4402_s7, %s3141_s14  ;;  %p3148_p2 = scmp.lt.u32.totalorder %s3141_s14, %s4402_s7 }
 0x1bc   : > { %p3144_p1 = pnand %p3142_p5, %p3596_p7 }
 0x1be   : > { %p3145_p12 = pneg %p3144_p1 }
 0x1c0   : > { %p3150_p4 = pnand %p3148_p2, %p3145_p12 }
 0x1c2   : > { %3153 = shalt.err (!%p3150_p4)
}
 0x1c3   : > { %s3154_s28 = scalar_lea.vmem %s633_s29, 16  ;;  %s3161_s30 = scalar_lea.vmem %s633_s29, 32 }
 0x1c4   : > { %p3155_p8 = scmp.ne.s32.totalorder %s633_s29, %s3154_s28  ;;  %p3162_p6 = scmp.lt.s32.totalorder %s633_s29, %s633_s29 }
 0x1c5   : > { %p3163_p9 = scmp.lt.s32.totalorder %s3161_s30, %s3154_s28 }
 0x1c6   : > { %p3157_p10 = pnand %p3155_p8, %p3596_p7 }
 0x1c7   : > { %p3164_p3 = por %p3163_p9, %p3162_p6 }
 0x1c8   : > { %p3158_p0 = pneg %p3157_p10 }
 0x1ca   : > { %p3165_p11 = pnand %p3164_p3, %p3158_p0 }
 0x1cc   : > { %3168 = shalt.err (!%p3165_p11)
}
 0x1cd   : > { %s4403_s4 = sld [smem:[#allocation48_spill]]  ;;  %s4404_s8 = sld [smem:[#allocation45_spill]] }
 0x1ce   : > { %s4405_s0 = sld [smem:[#allocation44_spill]]  ;;  %s4406_s16 = sld [smem:[#allocation43_spill]] }
 0x1cf   : > { %2557 = dma.hbm_to_vmem [thread:$0]  (!%p4393_p13), %s4402_s7, 16, %s633_s29, [#allocation29]  }
 0x1d0   : > { %s2204_s24 = sadd.s32 4294967294, %s3387_s1   ;;  %s55_s17 = sadd.s32 1, %s3383_s19 }
 0x1d1   : > { %p4407_p1 = scmp.eq.s32.totalorder %s3387_s1, 0  ;;  %p451_p4 = scmp.eq.s32.totalorder %s3565_s20, 3 }
 0x1d2   : > { %p457_p8 = scmp.eq.s32.totalorder %s2204_s24, 3  ;;  %p4409_p10 = scmp.eq.s32.totalorder %s3565_s20, 0 }
 0x1d3   : > { %s52_s18 = sadd.s32 1, %s4403_s4  ;;  %s64_s14 = sadd.s32 1, %s4404_s8 }
 0x1d4   : > { %p53_p7 = scmp.ge.s32.totalorder %s52_s18, 2  ;;  %p71_p5 = scmp.ne.s32.totalorder %s4404_s8, %s4405_s0 }
 0x1d5   : > { %p77_p2 = scmp.ne.s32.totalorder %s4405_s0, %s4406_s16  ;;  %s3976_s0 = sand.u32 1, %s4404_s8  }
 0x1d6   : > { %s4461_s18 = smov (%p53_p7, %s52_s18), 0  ;;  %s4463_s17 = smov (!%p53_p7, %s55_s17), %s3383_s19 }
 0x1d7   : > { %s60_s21 = ssub.s32 %s4403_s4, %s4461_s18  ;;  %p3950_p12 = por %p4407_p1, %p71_p5 }
 0x1d8   : > { %p57_p13 = scmp.ge.s32.totalorder %s4463_s17, 2  ;;  %p3961_p0 = por %p4409_p10, %p77_p2 }
 0x1d9   : > { %p3965_p6 = por %p451_p4, %p71_p5  ;;  %p3971_p9 = por %p457_p8, %p77_p2 }
 0x1da   : > { %s4465_s17 = smov (%p57_p13, %s4463_s17), 0  ;;  %s4413_s16 = sadd.s32 1, %s3355_s26 }
 0x1db   : > { %s4410_s3 = scalar_select %p3961_p0, 1, 0 }
 0x1dc   : > { %s4411_s28 = scalar_select %p3965_p6, 1, 0 }
 0x1dd   : > { %s59_s30 = ssub.s32 %s3383_s19, %s4465_s17  ;;  %s2221_s5 = sshll.u32 %s3976_s0, 3 }
 0x1de   : > { %s4412_s6 = scalar_select %p3971_p9, 1, 0 }
 0x1df   : > { %s61_s2 = sor.u32 %s60_s21, %s59_s30  ;;  %p88_p3 = scmp.eq.s32.totalorder %s59_s30, 0 }
 0x1e0   : > { %p62_p11 = scmp.eq.s32.totalorder %s61_s2, 0  ;;  %s2222_s7 = sshll.u32 %s3383_s19, 1 }
 0x1e1   : > { %s3981_s24 = scalar_select %p88_p3, %s3355_s26, %s4413_s16  }
 0x1e2   : > { %s4467_s8 = smov (!%p62_p11, %s4404_s8), %s64_s14  ;;  %s3989_s9 = sadd.s32 %s4403_s4, %s2222_s7 }
 0x1e3   : > { %s647_s10 = scalar_lea.vmem [#allocation4], %s2221_s5  ;;  %s2223_s30 = sshll.u32 %s3989_s9, 7 }
 0x1e4   : > { %s656_s21 = sshll.u32 %s647_s10, 4  ;;  %s4414_s12 = sld [smem:[#allocation50_spill]]  ;;  %s3992_s21 = int_to_ptr.vmem [resolvable:$true] %s656_s21 }
 0x1e5   : > { %p4415_p7 = scmp.lt.s32.totalorder %s3387_s1, 4  ;;  %s2229_s10 = sshll.u32 %s3989_s9, 5 }
 0x1e6   : > { %s644_s4 = scalar_lea.sflag [#allocation5], %s3976_s0 }
 0x1e7   : > { %p4003_p5 = pnand %p4415_p7, %p3950_p12 }
 0x1e9   : > { %p3171_p13 = pneg %p4003_p5 }
 0x1ea   : > { %s3997_s13 = scalar_lea.hbm %s4414_s12, %s2223_s30  ;;  %s3174_s16 = scalar_lea.hbm %s4414_s12, 512 }
 0x1eb   : > { %s3169_s14 = scalar_lea.hbm %s3997_s13, 128  ;;  %p3175_p12 = scmp.lt.u32.totalorder %s3997_s13, %s4414_s12 }
 0x1ec   : > { %p3170_p1 = scmp.ne.s32.totalorder %s3997_s13, %s3169_s14  ;;  %p3176_p8 = scmp.lt.u32.totalorder %s3174_s16, %s3169_s14 }
 0x1ed   : > { %p3178_p3 = scmp.lt.u32.totalorder %s3169_s14, %s3997_s13 }
 0x1ee   : > { %p3172_p2 = pnand %p3171_p13, %p3170_p1  ;;  %p3177_p10 = por %p3176_p8, %p3175_p12 }
 0x1f0   : > { %p3173_p4 = pneg %p3172_p2  ;;  %p3179_p11 = por %p3178_p3, %p3177_p10 }
 0x1f2   : > { %p3180_p7 = pnand %p3179_p11, %p3173_p4 }
 0x1f4   : > { %3183 = shalt.err (!%p3180_p7)
}
 0x1f5   : > { %s3184_s5 = scalar_lea.vmem %s3992_s21, 128  ;;  %s3406_s11 = smov [#allocation4]  }
 0x1f6   : > { %p3185_p1 = scmp.ne.s32.totalorder %s3992_s21, %s3184_s5  ;;  %s3189_s29 = sshll.u32 %s3406_s11, 4  ;;  %s3190_s29 = int_to_ptr.vmem [resolvable:$false] %s3189_s29 }
 0x1f7   : > { %s3191_s30 = scalar_lea.vmem %s3190_s29, 256  ;;  %p3192_p6 = scmp.lt.s32.totalorder %s3992_s21, %s3190_s29 }
 0x1f8   : > { %p3187_p2 = pnand %p3185_p1, %p3171_p13  ;;  %p3193_p12 = scmp.lt.s32.totalorder %s3191_s30, %s3184_s5 }
 0x1fa   : > { %p3188_p9 = pneg %p3187_p2  ;;  %p3194_p8 = por %p3193_p12, %p3192_p6 }
 0x1fc   : > { %p3195_p10 = pnand %p3194_p8, %p3188_p9 }
 0x1fe   : > { %3198 = shalt.err (!%p3195_p10)
}
 0x1ff   : > { %2561 = dma.hbm_to_vmem [thread:$0]  (!%p4003_p5), %s3997_s13, 128, %s3992_s21, %s644_s4  }
 0x200   : > { %s4417_s2 = sld [smem:[#allocation52_spill]]  ;;  %s4418_s12 = sshll.u32 %s3976_s0, 1 }
 0x201   : > { %s688_s5 = scalar_lea.vmem [#allocation9], %s4418_s12 }
 0x202   : > { %s697_s29 = sshll.u32 %s688_s5, 4  ;;  %s698_s29 = int_to_ptr.vmem [resolvable:$true] %s697_s29 }
 0x206   : > { %s4040_s11 = scalar_lea.hbm %s4417_s2, %s2229_s10  ;;  %s3204_s21 = scalar_lea.hbm %s4417_s2, 128 }
 0x207   : > { %s3199_s30 = scalar_lea.hbm %s4040_s11, 32  ;;  %p3205_p3 = scmp.lt.u32.totalorder %s4040_s11, %s4417_s2 }
 0x208   : > { %p3200_p6 = scmp.ne.s32.totalorder %s4040_s11, %s3199_s30  ;;  %p3206_p11 = scmp.lt.u32.totalorder %s3204_s21, %s3199_s30 }
 0x209   : > { %p3208_p1 = scmp.lt.u32.totalorder %s3199_s30, %s4040_s11 }
 0x20a   : > { %p3202_p9 = pnand %p3200_p6, %p3171_p13  ;;  %p3207_p7 = por %p3206_p11, %p3205_p3 }
 0x20c   : > { %p3203_p4 = pneg %p3202_p9  ;;  %p3209_p2 = por %p3208_p1, %p3207_p7 }
 0x20e   : > { %p3210_p12 = pnand %p3209_p2, %p3203_p4 }
 0x210   : > { %3213 = shalt.err (!%p3210_p12)
}
 0x211   : > { %s3214_s12 = scalar_lea.vmem %s698_s29, 32  ;;  %s3407_s0 = smov [#allocation9]  }
 0x212   : > { %p3215_p8 = scmp.ne.s32.totalorder %s698_s29, %s3214_s12  ;;  %s3219_s14 = sshll.u32 %s3407_s0, 4  ;;  %s3220_s14 = int_to_ptr.vmem [resolvable:$false] %s3219_s14 }
 0x213   : > { %s3221_s16 = scalar_lea.vmem %s3220_s14, 64  ;;  %p3222_p9 = scmp.lt.s32.totalorder %s698_s29, %s3220_s14 }
 0x214   : > { %p3217_p10 = pnand %p3215_p8, %p3171_p13  ;;  %p3223_p0 = scmp.lt.s32.totalorder %s3221_s16, %s3214_s12 }
 0x216   : > { %p3218_p6 = pneg %p3217_p10  ;;  %p3224_p3 = por %p3223_p0, %p3222_p9 }
 0x218   : > { %p3225_p11 = pnand %p3224_p3, %p3218_p6 }
 0x21a   : > { %3228 = shalt.err (!%p3225_p11)
}
 0x21b   : > { %2567 = dma.hbm_to_vmem [thread:$0]  (!%p4003_p5), %s4040_s11, 32, %s698_s29, %s3780_s27  }
 0x21c   : > { %s4419_s5 = sld [smem:[#allocation49_spill]] }
 0x222   : > { %p4420_p4 = scmp.ne.s32.totalorder %s4419_s5, 0 }
 0x223   : > { %s4421_s30 = sld [smem:[#allocation44_spill]] (!%p4420_p4)  ;;  %p4422_p0 = scmp.ne.s32.totalorder (!%p4420_p4), %s4410_s3, 0 }
 0x224   : > { %706 = sbr.rel (%p4420_p4) target bundleno = 2863 (0xb2f), region = 88 }
 0x229   : > { %s4067_s9 = sand.u32 (!%p4420_p4), 1, %s4421_s30  }
 0x22a   : > { %s2231_s13 = sshll.u32 (!%p4420_p4), %s4067_s9, 3  ;;  %s709_s21 = scalar_lea.sflag (!%p4420_p4), [#allocation5], %s4067_s9 }
 0x22b   : > { %s712_s10 = scalar_lea.vmem [#allocation4], %s2231_s13 }
 0x22c   : > { %3302 = dma.done.wait (%p4422_p0), %s709_s21, 128  }
 0x22d   : > { %3304 = vsyncadd (%p4422_p0), %s709_s21, 4294967168  ;;  %s717_s27 = sand.u32 1, %s3565_s20   ;;  %s719_s7 = sand.u32 1, %s3351_s25  }
 0x22e   : > { %s4079_s11 = sshll.u32 %s719_s7, 3  ;;  %s718_s29 = scalar_lea.sflag [#allocation8], %s717_s27 }
 0x22f   : > { %s721_s4 = scalar_lea.vmem [#allocation7], %s4079_s11  ;;  %p4423_p5 = scmp.ne.s32.totalorder %s4388_s22, 0 }
 0x231   : > { %3306 = dma.done.wait (%p4423_p5), %s718_s29, 128  }
 0x232   : > { %3308 = vsyncadd (%p4423_p5), %s718_s29, 4294967168  ;;  %s2233_s12 = sshll.u32 %s4067_s9, 1 }
 0x233   : > { %s4087_s0 = scalar_lea.vmem [#allocation9], %s2233_s12 }
 0x234   : > { %3310 = dma.done.wait (%p4422_p0), %s718_s29, 32  }
 0x235   : > { %3312 = vsyncadd (%p4422_p0), %s718_s29, 4294967264  ;;  %p4424_p13 = scmp.eq.s32.totalorder %s3565_s20, 0 }
 0x237   : > { %3314 = dma.done.wait (%p4424_p13), [#allocation11], 272   ;;  %p4425_p7 = pmov %p4424_p13 }
 0x239   : > { %3316 = vsyncadd (%p4425_p7), [#allocation11], 4294967024  ;;  %p4426_p1 = pmov %p4425_p7 }
 0x23b   : > { %3318 = dma.done.wait (%p4426_p1), [#allocation14], 272   ;;  %p4427_p2 = pmov %p4426_p1 }
 0x23c   : > { %p4428_p12 = pmov %p4426_p1 }
 0x23d   : > { %3320 = vsyncadd (%p4427_p2), [#allocation14], 4294967024 }
 0x23e   : > { %3322 = dma.done.wait (%p4428_p12), [#allocation17], 272   ;;  %p4429_p8 = pmov %p4426_p1 }
 0x23f   : > { %p4430_p10 = pmov %p4426_p1 }
 0x240   : > { %3324 = vsyncadd (%p4429_p8), [#allocation17], 4294967024 }
 0x241   : > { %3326 = dma.done.wait (%p4430_p10), [#allocation20], 272   ;;  %p4431_p6 = pmov %p4426_p1 }
 0x242   : > { %p4432_p9 = pmov %p4426_p1 }
 0x243   : > { %3328 = vsyncadd (%p4431_p6), [#allocation20], 4294967024 }
 0x244   : > { %3330 = dma.done.wait (%p4432_p9), [#allocation23], 272   ;;  %p4433_p3 = pmov %p4426_p1 }
 0x245   : > { %p4434_p11 = pmov %p4426_p1 }
 0x246   : > { %3332 = vsyncadd (%p4433_p3), [#allocation23], 4294967024 }
 0x247   : > { %3334 = dma.done.wait (%p4434_p11), [#allocation26], 528   ;;  %p4435_p4 = pmov %p4426_p1 }
 0x248   : > { %p4436_p0 = pmov %p4426_p1 }
 0x249   : > { %3336 = vsyncadd (%p4435_p4), [#allocation26], 4294966768 }
 0x24a   : > { %3338 = dma.done.wait (%p4436_p0), [#allocation29], 32   ;;  %p4437_p5 = pmov %p4436_p0 }
 0x24b   : > { %v4121_v0 = vld [vmem:[%s712_s10] sm:$0xff]  ;;  %s4125_s22 = scalar_lea.vmem [#allocation31], %s2231_s13  ;;  %s4438_s3 = sld [smem:[#allocation46_spill]] }
 0x24c   : > { %3340 = vsyncadd (%p4437_p5), [#allocation29], 4294967264 }
 0x251   : > { %p2249_p13 = scmp.ne.s32.totalorder %s4438_s3, 0 }
 0x252   : > { %v2716_v1 = vld [vmem:[#allocation13] sm:$0xff] (!%p2249_p13)   ;;  %v3408_v2 = vmov (!%p2249_p13), 0.0   ;;  %v2717_v3 = vld [vmem:[#allocation16] sm:$0xff] (!%p2249_p13)   ;;  %v2718_v4 = vld [vmem:[#allocation13 + $0x8] sm:$0xff] (!%p2249_p13)   ;;  %vm3409_vm0 = vmmov (!%p2249_p13), 0   ;;  %vm883_vm1 = vcmask (!%p2249_p13), 261120  }
 0x253   : > { %852 = sbr.rel (%p2249_p13) target bundleno = 945 (0x3b1), region = 160  ;;  %2335 = vmatprep.subr.bf16.mxu0 (!%p2249_p13), %v3408_v2  ;;  %2343 = vmatprep.subr.bf16.mxu1 (!%p2249_p13), %v3408_v2  ;;  %v2719_v5 = vld [vmem:[#allocation16 + $0x8] sm:$0xff] (!%p2249_p13)   ;;  %v2255_v7 = vld [vmem:[#allocation18] ss:$0 sm:$0xff] (!%p2249_p13)  ;;  %v2250_v8 = vld [vmem:[#allocation15] ss:$0 sm:$0xff] (!%p2249_p13) }
 0x254   : > { %2336 = vmatpush3.bf16.msra.mxu0 (!%p2249_p13), %v2716_v1  ;;  %2339 = vmatprep.mubr.msk.bf16.mxu0 (!%p2249_p13), %vm3409_vm0, %v3408_v2  ;;  %v2720_v6 = vld [vmem:[%s721_s4] sm:$0xff] (!%p2249_p13)   ;;  %vm993_vm2 = vcmask (!%p2249_p13), 64512   ;;  %s3410_s20 = smov (!%p2249_p13), 112   ;;  %s3411_s14 = smov (!%p2249_p13), 120  }
 0x255   : > { %2344 = vmatpush3.bf16.msra.mxu1 (!%p2249_p13), %v2717_v3  ;;  %2337 = vmatprep.subr.bf16.mxu0 (!%p2249_p13), %v3408_v2  ;;  %s3412_s16 = smov (!%p2249_p13), 104  }
 0x256   : > { %2345 = vmatprep.subr.bf16.mxu1 (!%p2249_p13), %v3408_v2  ;;  %2347 = vmatprep.mubr.msk.bf16.mxu1 (!%p2249_p13), %vm3409_vm0, %v3408_v2 }
 0x258   : > { %2338 = vmatpush3.bf16.msra.mxu0 (!%p2249_p13), %v2718_v4 }
 0x259   : > { %2346 = vmatpush3.bf16.msra.mxu1 (!%p2249_p13), %v2719_v5 }
 0x25b   : > { %2340 = vmatmul.mubr.msk.bf16.vlgmr.msra.gmra.mrb[0].mxu0 %vm883_vm1, %v2720_v6 }
 0x25c   : > { %2348 = vmatmul.mubr.msk.bf16.vlgmr.msra.gmra.mrb[0].mxu1 %vm883_vm1, %v2720_v6 }
 0x32e   : > { %v921_v9 = vpop.f32.mrb[0].mxu0 }
 0x32f   : > { %v2341_v10 = vpop.f32.mrb[1].mxu0  ;;  %v985_v11 = vpop.f32.mrb[0].mxu1  ;;  %v922_v15 = vadd.f32 %v2250_v8, %v921_v9 }
 0x330   : > { %v986_v12 = vadd.f32 %v2255_v7, %v985_v11  ;;  %v924_v13 = vpop.f32.mrb[2].mxu0  ;;  %v2349_v14 = vpop.f32.mrb[1].mxu1 }
 0x331   : > { %v925_v16 = vadd.f32 %v2250_v8, %v924_v13  ;;  %v2342_v17 = vpop.f32.mrb[3].mxu0  ;;  %v988_v18 = vpop.f32.mrb[2].mxu1 }
 0x332   : > { %v989_v19 = vadd.f32 %v2255_v7, %v988_v18  ;;  %v2350_v20 = vpop.f32.mrb[3].mxu1 }
 0x333   : > { %v992_v21 = vpack.c.bf16 %v925_v16, %v922_v15 }
 0x334   : > { %v995_v22 = vpack.c.bf16 %v989_v19, %v986_v12 }
 0x335   : > { %994 = vst.msk [vmem:[#allocation2] sm:$0xff] %vm993_vm2, %v992_v21  ;;  %1009 = vrot.lane.b32.xlu1 %v992_v21, %s3410_s20  ;;  %998 = vrot.lane.b32.xlu0 %v992_v21, %s3411_s14 }
 0x336   : > { %996 = vst.msk [vmem:[#allocation3] sm:$0xff] %vm993_vm2, %v995_v22 }
 0x339   : > { %1014 = vrot.lane.b32.xlu1 %v995_v22, %s3410_s20  ;;  %1004 = vrot.lane.b32.xlu0 %v995_v22, %s3411_s14 }
 0x33d   : > { %1024 = vrot.lane.b32.xlu1 %v995_v22, %s3412_s16  ;;  %1019 = vrot.lane.b32.xlu0 %v992_v21, %s3412_s16 }
 0x3a7   : > { %v1010_v23 = vpop.permute.xlu1 %1009  ;;  %v999_v24 = vpop.permute.xlu0 %998 }
 0x3a8   : > { %1013 = vst.msk [vmem:[#allocation2 + $0x10] sm:$0xff] %vm993_vm2, %v1010_v23  ;;  %1002 = vst.msk [vmem:[#allocation2 + $0x8] sm:$0xff] %vm993_vm2, %v999_v24 }
 0x3ab   : > { %v1015_v25 = vpop.permute.xlu1 %1014  ;;  %v1005_v26 = vpop.permute.xlu0 %1004 }
 0x3ac   : > { %1018 = vst.msk [vmem:[#allocation3 + $0x10] sm:$0xff] %vm993_vm2, %v1015_v25  ;;  %1008 = vst.msk [vmem:[#allocation3 + $0x8] sm:$0xff] %vm993_vm2, %v1005_v26 }
 0x3af   : > { %v1025_v27 = vpop.permute.xlu1 %1024  ;;  %v1020_v28 = vpop.permute.xlu0 %1019 }
 0x3b0   : > { %1028 = vst.msk [vmem:[#allocation3 + $0x18] sm:$0xff] %vm993_vm2, %v1025_v27  ;;  %1023 = vst.msk [vmem:[#allocation2 + $0x18] sm:$0xff] %vm993_vm2, %v1020_v28 }
 0x3b1 PF: > { %v2721_v29 = vld [vmem:[#allocation10] sm:$0xff]   ;;  %v3413_v30 = vmov 0.0   ;;  %v2722_v31 = vld [vmem:[#allocation10 + $0x8] sm:$0xff]   ;;  %vm3414_vm3 = vmmov 0   ;;  %vm1056_vm4 = vcmask 261120   ;;  %v1032_v32 = vpack.c.bf16 %v4121_v0, %v4121_v0  ;;  %s3415_s5 = smov 104  }
 0x3b2   : > { %2351 = vmatprep.subr.bf16.mxu1 %v3413_v30  ;;  %2365 = vmatprep.subr.bf16.mxu0 %v3413_v30  ;;  %v1114_v33 = vld [vmem:[#allocation2] sm:$0xff]  ;;  %vm1122_vm5 = vcmask 64512   ;;  %v1115_v35 = vld [vmem:[#allocation2 + $0x8] sm:$0xff]  ;;  %v2259_v37 = vld [vmem:[#allocation12] ss:$0 sm:$0xff]  ;;  %s3416_s30 = smov 120  }
 0x3b3   : > { %2352 = vmatpush3.bf16.msra.mxu1 %v2721_v29  ;;  %2355 = vmatprep.mubr.msk.bf16.mxu1 %vm3414_vm3, %v3413_v30  ;;  %v1127_v34 = vsel %vm1122_vm5, %v1114_v33, 0  ;;  %v1173_v36 = vsel %vm1122_vm5, %v1115_v35, 0  ;;  %v1116_v39 = vld [vmem:[#allocation2 + $0x10] sm:$0xff]  ;;  %s3417_s13 = smov 112   ;;  %v1029_v54 = vld [vmem:[%s4087_s0] sm:$0x3] }
 0x3b4   : > { %2353 = vmatprep.subr.bf16.mxu1 %v3413_v30  ;;  %2367 = vmatprep.mubr.msk.bf16.mxu0 %vm3414_vm3, %v3413_v30  ;;  %v1219_v45 = vsel %vm1122_vm5, %v1116_v39, 0  ;;  %v1030_v55 = vunpack.c.0.s8 %v1029_v54  ;;  %vm1313_vm7 = vcmask 130048   ;;  %v1118_v63 = vld [vmem:[#allocation3] sm:$0xff]  ;;  %v1119_v20 = vld [vmem:[#allocation3 + $0x8] sm:$0xff]  ;;  %v1120_v26 = vld [vmem:[#allocation3 + $0x10] sm:$0xff]  ;;  %vm1544_vm8 = vcmask 1043456  }
 0x3b5   : > { %2366 = vmatpush3.bf16.xpose.msra.mxu0 %v1173_v36  ;;  %v1684_v54 = vld [vmem:[#allocation19 + $0xc] sm:$0xf]  ;;  %vm1848_vm9 = vcmask 523264   ;;  %s4441_s21 = sld [smem:[#allocation47_spill]]  ;;  %s4442_s10 = sld [smem:[#allocation46_spill]] }
 0x3b6   : > { %2377 = vmatprep.subr.bf16.mxu0 %v3413_v30  ;;  %vm4172_vm6 = vcmp.ne.s32.totalorder %v1030_v55, 0  ;;  %s1940_s29 = sshll.u32 %s4125_s22, 4  ;;  %s4443_s0 = sld [smem:[#allocation66_spill]]  ;;  %s4244_s29 = int_to_ptr.vmem [resolvable:$true] %s1940_s29 }
 0x3b7   : > { %2354 = vmatpush3.bf16.msra.mxu1 %v2722_v31  ;;  %v1117_v46 = vld [vmem:[#allocation2 + $0x18] sm:$0xff]  ;;  %s1925_s14 = scalar_lea.sflag [#allocation6], %s4067_s9  ;;  %s3229_s16 = scalar_lea.vmem %s4244_s29, 128 }
 0x3b8   : > { %2359 = vmatprep.subr.bf16.mxu1 %v3413_v30  ;;  %v1265_v49 = vsel %vm1122_vm5, %v1117_v46, 0  ;;  %p3230_p7 = scmp.ne.s32.totalorder %s4244_s29, %s3229_s16  ;;  %p4445_p1 = scmp.ne.s32.totalorder %s4411_s28, 0 }
 0x3ba   : > { %2356 = vmatmul.mubr.msk.bf16.vlgmr.msra.gmra.mrb[0].mxu1 %vm1056_vm4, %v1032_v32  ;;  %p3231_p2 = pnand %p3230_p7, %p4445_p1 }
 0x3bb   : > { %2361 = vmatprep.mubr.msk.bf16.mxu1 %vm3414_vm3, %v3413_v30  ;;  %s2289_s27 = sshll.u32 %s4441_s21, 1 }
 0x3bc   : > { %s1936_s7 = sadd.s32 %s4442_s10, %s2289_s27  ;;  %s4444_s3 = smov %s4443_s0 }
 0x3bd   : > { %s2290_s11 = sshll.u32 %s1936_s7, 7  ;;  %p3232_p12 = pneg %p3231_p2 }
 0x3be   : > { %s4242_s20 = scalar_lea.hbm %s4443_s0, %s2290_s11 }
 0x3c0   : > { %2360 = vmatpush3.bf16.xpose.msra.mxu1 %v1127_v34 }
 0x3c1   : > { %2371 = vmatprep.subr.bf16.mxu1 %v3413_v30 }
 0x48d   : > { %v1094_v38 = vpop.f32.mrb[0].mxu1 }
 0x48e   : > { %v1095_v40 = vadd.f32 %v2259_v37, %v1094_v38  ;;  %v2357_v41 = vpop.f32.mrb[1].mxu1 }
 0x48f   : > { %v1097_v42 = vpop.f32.mrb[2].mxu1 }
 0x490   : > { %v1110_v43 = vpack.c.bf16 %v1095_v40, %v1095_v40  ;;  %1107 = vrot.lane.b32.xlu1 %v1095_v40, %s3415_s5  ;;  %1101 = vrot.lane.b32.xlu0 %v1095_v40, %s3416_s30  ;;  %v2358_v44 = vpop.f32.mrb[3].mxu1  ;;  %s3418_s5 = smov [#allocation31]  }
 0x491   : > { %v1538_v44 = vld [vmem:[#allocation19] sm:$0xf]  ;;  %s3233_s30 = sshll.u32 %s3418_s5, 4  ;;  %s3234_s30 = int_to_ptr.vmem [resolvable:$false] %s3233_s30 }
 0x492   : > { %2362 = vmatmul.mubr.msk.bf16.vlgmr.msra.gmra.mrb[4].mxu1 %vm1122_vm5, %v1110_v43  ;;  %p3236_p8 = scmp.lt.s32.totalorder %s4244_s29, %s3234_s30 }
 0x493   : > { %2372 = vmatpush3.bf16.xpose.msra.mxu1 %v1219_v45  ;;  %2373 = vmatprep.mubr.msk.bf16.mxu1 %vm3414_vm3, %v3413_v30 }
 0x494   : > { %1104 = vrot.lane.b32.xlu0 %v1095_v40, %s3417_s13  ;;  %2383 = vmatprep.subr.bf16.mxu1 %v3413_v30  ;;  %v1121_v40 = vld [vmem:[#allocation3 + $0x18] sm:$0xff]  ;;  %s3235_s13 = scalar_lea.vmem %s3234_s30, 256 }
 0x495   : > { %p3237_p10 = scmp.lt.s32.totalorder %s3235_s13, %s3229_s16 }
 0x497   : > { %p3238_p6 = por %p3237_p10, %p3236_p8 }
 0x499   : > { %p3239_p9 = pnand %p3238_p6, %p3232_p12 }
 0x502   : > { %v1102_v47 = vpop.permute.xlu0 %1101  ;;  %v1108_v52 = vpop.permute.xlu1 %1107 }
 0x503   : > { %v1111_v48 = vpack.c.bf16 %v1102_v47, %v1102_v47  ;;  %v1113_v53 = vpack.c.bf16 %v1108_v52, %v1108_v52 }
 0x505   : > { %2368 = vmatmul.mubr.msk.bf16.vlgmr.msra.gmra.mrb[0].mxu0 %vm1122_vm5, %v1111_v48  ;;  %v1592_v48 = vsel %vm1544_vm8, %v1538_v44, 0 }
 0x506   : > { %2378 = vmatpush3.bf16.xpose.msra.mxu0 %v1265_v49  ;;  %v1105_v50 = vpop.permute.xlu0 %1104  ;;  %2379 = vmatprep.mubr.msk.bf16.mxu0 %vm3414_vm3, %v3413_v30  ;;  %v1540_v49 = vld [vmem:[#allocation19 + $0x4] sm:$0xf] }
 0x507   : > { %v1112_v51 = vpack.c.bf16 %v1105_v50, %v1105_v50  ;;  %2389 = vmatprep.subr.bf16.mxu0 %v3413_v30  ;;  %v1546_v50 = vsel %vm1544_vm8, %v1540_v49, 0 }
 0x509   : > { %2374 = vmatmul.mubr.msk.bf16.vlgmr.msra.gmra.mrb[8].mxu1 %vm1122_vm5, %v1112_v51 }
 0x50a   : > { %2385 = vmatprep.mubr.msk.bf16.mxu1 %vm3414_vm3, %v3413_v30  ;;  %2384 = vmatpush3.bf16.msra.mxu1 %v1118_v63 }
 0x50b   : > { %2395 = vmatprep.subr.bf16.mxu1 %v3413_v30 }
 0x50d   : > { %2380 = vmatmul.mubr.msk.bf16.vlgmr.msra.gmra.mrb[4].mxu0 %vm1122_vm5, %v1113_v53 }
 0x50e   : > { %2391 = vmatprep.mubr.msk.bf16.mxu0 %vm3414_vm3, %v3413_v30  ;;  %2390 = vmatpush3.bf16.msra.mxu0 %v1119_v20 }
 0x50f   : > { %2401 = vmatprep.subr.bf16.mxu0 %v3413_v30 }
 0x565   : > { %v1163_v57 = vpop.f32.mrb[4].mxu1 }
 0x566   : > { %v1309_v58 = vsel %vm4172_vm6, %v1163_v57, -10000.0  ;;  %v2363_v59 = vpop.f32.mrb[5].mxu1 }
 0x567   : > { %v1166_v60 = vpop.f32.mrb[6].mxu1  ;;  %v1314_v61 = vsel %vm1313_vm7, %v1309_v58, -inf }
 0x568   : > { %v2364_v62 = vpop.f32.mrb[7].mxu1  ;;  %1315 = vmax.xlane.f32.xlu1 %v1314_v61  ;;  %v1689_v60 = vsel %vm1544_vm8, %v1684_v54, 0 }
 0x5d8   : > { %v1209_v1 = vpop.f32.mrb[0].mxu0 }
 0x5d9   : > { %v1310_v2 = vsel %vm4172_vm6, %v1209_v1, -10000.0  ;;  %v2369_v3 = vpop.f32.mrb[1].mxu0 }
 0x5da   : > { %v1212_v4 = vpop.f32.mrb[2].mxu0  ;;  %v1317_v5 = vsel %vm1313_vm7, %v1310_v2, -inf  ;;  %v1635_v3 = vld [vmem:[#allocation19 + $0x8] sm:$0xf] }
 0x5db   : > { %v2370_v6 = vpop.f32.mrb[3].mxu0  ;;  %1318 = vmax.xlane.f32.xlu0 %v1317_v5 }
 0x5dc   : > { %v1255_v7 = vpop.f32.mrb[8].mxu1 }
 0x5dd   : > { %v1311_v8 = vsel %vm4172_vm6, %v1255_v7, -10000.0  ;;  %v2375_v9 = vpop.f32.mrb[9].mxu1 }
 0x5de   : > { %v1258_v10 = vpop.f32.mrb[10].mxu1  ;;  %v1320_v11 = vsel %vm1313_vm7, %v1311_v8, -inf  ;;  %v1640_v9 = vsel %vm1544_vm8, %v1635_v3, 0 }
 0x5df   : > { %v2376_v12 = vpop.f32.mrb[11].mxu1  ;;  %1321 = vmax.xlane.f32.xlu0 %v1320_v11 }
 0x5e0   : > { %v1301_v13 = vpop.f32.mrb[4].mxu0 }
 0x5e1   : > { %v1312_v14 = vsel %vm4172_vm6, %v1301_v13, -10000.0  ;;  %v2381_v15 = vpop.f32.mrb[5].mxu0 }
 0x5e2   : > { %v1304_v16 = vpop.f32.mrb[6].mxu0  ;;  %v1323_v17 = vsel %vm1313_vm7, %v1312_v14, -inf }
 0x5e3   : > { %v2382_v18 = vpop.f32.mrb[7].mxu0  ;;  %1324 = vmax.xlane.f32.xlu1 %v1323_v17 }
 0x5f5   : > { %v1316_v19 = vpop.xlane.xlu1 %1315 }
 0x5f6   : > { %v1326_v21 = vsub.f32 %v1309_v58, %v1316_v19 }
 0x5f8   : > { %v1330_v22 = vmul.f32 1.442695, %v1326_v21 }
 0x5fa   : > { %2729 = vpow2.f32 %v1330_v22 }
 0x604   : > { %v2730_v23 = vpop.eup %2729 }
 0x605   : > { %v1338_v24 = vsel %vm1313_vm7, %v2730_v23, 0.0  ;;  %v1350_v25 = vpack.c.bf16 %v2730_v23, %v2730_v23 }
 0x606   : > { %1339 = vadd.xlane.f32.xlu1 %v1338_v24  ;;  %v2723_v24 = vld [vmem:[#allocation22] sm:$0xff]  }
 0x607   : > { %2386 = vmatmul.mubr.msk.bf16.vlgmr.msra.gmra.mrb[12].mxu1 %vm1313_vm7, %v1350_v25  ;;  %v2724_v25 = vld [vmem:[#allocation22 + $0x8] sm:$0xff]  }
 0x608   : > { %2396 = vmatpush3.bf16.msra.mxu1 %v1120_v26  ;;  %2397 = vmatprep.mubr.msk.bf16.mxu1 %vm3414_vm3, %v3413_v30 }
 0x609   : > { %2407 = vmatprep.subr.bf16.mxu1 %v3413_v30 }
 0x668   : > { %v1319_v27 = vpop.xlane.xlu0 %1318 }
 0x669   : > { %v1327_v28 = vsub.f32 %v1310_v2, %v1319_v27 }
 0x66b   : > { %v1332_v29 = vmul.f32 1.442695, %v1327_v28 }
 0x66c   : > { %v1322_v31 = vpop.xlane.xlu0 %1321 }
 0x66d   : > { %2731 = vpow2.f32 %v1332_v29  ;;  %v1328_v32 = vsub.f32 %v1311_v8, %v1322_v31  ;;  %v2725_v31 = vld [vmem:[#allocation25] sm:$0xff]  }
 0x66f   : > { %v1334_v33 = vmul.f32 1.442695, %v1328_v32  ;;  %v2726_v32 = vld [vmem:[#allocation25 + $0x8] sm:$0xff]  }
 0x670   : > { %v1325_v34 = vpop.xlane.xlu1 %1324 }
 0x671   : > { %2733 = vpow2.f32 %v1334_v33  ;;  %v1329_v35 = vsub.f32 %v1312_v14, %v1325_v34 }
 0x673   : > { %v1336_v36 = vmul.f32 1.442695, %v1329_v35 }
 0x675   : > { %2735 = vpow2.f32 %v1336_v36 }
 0x677   : > { %v2732_v37 = vpop.eup %2731 }
 0x678   : > { %v1341_v38 = vsel %vm1313_vm7, %v2732_v37, 0.0  ;;  %v1351_v39 = vpack.c.bf16 %v2732_v37, %v2732_v37 }
 0x679   : > { %1342 = vadd.xlane.f32.xlu0 %v1341_v38 }
 0x67a   : > { %2392 = vmatmul.mubr.msk.bf16.vlgmr.msra.gmra.mrb[8].mxu0 %vm1313_vm7, %v1351_v39 }
 0x67b   : > { %v2734_v41 = vpop.eup %2733  ;;  %2402 = vmatpush3.bf16.msra.mxu0 %v1121_v40  ;;  %2403 = vmatprep.mubr.msk.bf16.mxu0 %vm3414_vm3, %v3413_v30 }
 0x67c   : > { %v1344_v42 = vsel %vm1313_vm7, %v2734_v41, 0.0  ;;  %v1352_v43 = vpack.c.bf16 %v2734_v41, %v2734_v41  ;;  %2413 = vmatprep.subr.bf16.mxu0 %v3413_v30 }
 0x67d   : > { %1345 = vadd.xlane.f32.xlu0 %v1344_v42 }
 0x67e   : > { %2398 = vmatmul.mubr.msk.bf16.vlgmr.msra.gmra.mrb[16].mxu1 %vm1313_vm7, %v1352_v43  ;;  %v2275_v43 = vld [vmem:[#allocation21] ss:$0 sm:$0xff] }
 0x67f   : > { %v2736_v45 = vpop.eup %2735  ;;  %2409 = vmatprep.mubr.msk.bf16.mxu1 %vm3414_vm3, %v3413_v30  ;;  %2408 = vmatpush3.bf16.msra.mxu1 %v1546_v50 }
 0x680   : > { %v1347_v46 = vsel %vm1313_vm7, %v2736_v45, 0.0  ;;  %v1353_v47 = vpack.c.bf16 %v2736_v45, %v2736_v45  ;;  %2419 = vmatprep.subr.bf16.mxu1 %v3413_v30 }
 0x681   : > { %1348 = vadd.xlane.f32.xlu1 %v1347_v46 }
 0x682   : > { %2404 = vmatmul.mubr.msk.bf16.vlgmr.msra.gmra.mrb[12].mxu0 %vm1313_vm7, %v1353_v47 }
 0x683   : > { %2414 = vmatpush3.bf16.msra.mxu0 %v1592_v48  ;;  %2415 = vmatprep.mubr.msk.bf16.mxu0 %vm3414_vm3, %v3413_v30 }
 0x684   : > { %2425 = vmatprep.subr.bf16.mxu0 %v3413_v30 }
 0x693   : > { %v1340_v51 = vpop.xlane.xlu1 %1339 }
 0x694   : > { %2737 = vrcp.f32 %v1340_v51  ;;  %v2727_v51 = vld [vmem:[#allocation25 + $0x10] sm:$0xff]  }
 0x69e   : > { %v2738_v52 = vpop.eup %2737 }
 0x6da   : > { %v1391_v53 = vpop.f32.mrb[12].mxu1 }
 0x6db   : > { %v1530_v55 = vmul.f32 %v2738_v52, %v1391_v53  ;;  %v2387_v56 = vpop.f32.mrb[13].mxu1  ;;  %v2728_v52 = vld [vmem:[#allocation25 + $0x18] sm:$0xff]  }
 0x6dc   : > { %v1394_v57 = vpop.f32.mrb[14].mxu1  ;;  %v2276_v53 = vld [vmem:[#allocation24] ss:$0 sm:$0xff] }
 0x6dd   : > { %v1534_v58 = vpack.c.bf16 %v1530_v55, %v1530_v55  ;;  %v2388_v59 = vpop.f32.mrb[15].mxu1 }
 0x6df   : > { %2416 = vmatmul.mubr.msk.bf16.vlgmr.msra.gmra.mrb[16].mxu0 %vm1122_vm5, %v1534_v58 }
 0x6e0   : > { %2426 = vmatpush3.bf16.msra.mxu0 %v1689_v60  ;;  %2427 = vmatprep.mubr.msk.bf16.mxu0 %vm3414_vm3, %v3413_v30 }
 0x6e1   : > { %2439 = vmatprep.subr.bf16.mxu0 %v3413_v30 }
 0x706   : > { %v1343_v61 = vpop.xlane.xlu0 %1342 }
 0x707   : > { %2739 = vrcp.f32 %v1343_v61  ;;  %v2280_v61 = vld [vmem:[#allocation27] ss:$0 sm:$0xff] }
 0x70a   : > { %v1346_v62 = vpop.xlane.xlu0 %1345 }
 0x70b   : > { %2741 = vrcp.f32 %v1346_v62 }
 0x70e   : > { %v1349_v63 = vpop.xlane.xlu1 %1348 }
 0x70f   : > { %2743 = vrcp.f32 %v1349_v63 }
 0x711   : > { %v2740_v1 = vpop.eup %2739 }
 0x715   : > { %v2742_v12 = vpop.eup %2741 }
 0x719   : > { %v2744_v16 = vpop.eup %2743 }
 0x74d   : > { %v1434_v2 = vpop.f32.mrb[8].mxu0 }
 0x74e   : > { %v1531_v4 = vmul.f32 %v2740_v1, %v1434_v2  ;;  %v2393_v5 = vpop.f32.mrb[9].mxu0 }
 0x74f   : > { %v1437_v6 = vpop.f32.mrb[10].mxu0 }
 0x750   : > { %v1535_v7 = vpack.c.bf16 %v1531_v4, %v1531_v4  ;;  %v2394_v8 = vpop.f32.mrb[11].mxu0 }
 0x751   : > { %v1477_v10 = vpop.f32.mrb[16].mxu1 }
 0x752   : > { %v2399_v11 = vpop.f32.mrb[17].mxu1  ;;  %2410 = vmatmul.mubr.msk.bf16.vlgmr.msra.gmra.mrb[20].mxu1 %vm1122_vm5, %v1535_v7  ;;  %v1532_v14 = vmul.f32 %v2742_v12, %v1477_v10 }
 0x753   : > { %2420 = vmatpush3.bf16.msra.mxu1 %v1640_v9  ;;  %v1480_v13 = vpop.f32.mrb[18].mxu1  ;;  %2421 = vmatprep.mubr.msk.bf16.mxu1 %vm3414_vm3, %v3413_v30 }
 0x754   : > { %v2400_v15 = vpop.f32.mrb[19].mxu1  ;;  %2431 = vmatprep.subr.bf16.mxu1 %v3413_v30  ;;  %v1536_v21 = vpack.c.bf16 %v1532_v14, %v1532_v14  ;;  %v2286_v13 = vld [vmem:[#allocation28] ss:$0 sm:$0xff] }
 0x755   : > { %v1520_v17 = vpop.f32.mrb[12].mxu0  ;;  %v2287_v15 = vld [vmem:[#allocation30] ss:$0 sm:$0xff] }
 0x756   : > { %v1533_v18 = vmul.f32 %v2744_v16, %v1520_v17  ;;  %v2405_v19 = vpop.f32.mrb[13].mxu0 }
 0x757   : > { %v1523_v20 = vpop.f32.mrb[14].mxu0 }
 0x758   : > { %v1537_v22 = vpack.c.bf16 %v1533_v18, %v1533_v18  ;;  %v2406_v23 = vpop.f32.mrb[15].mxu0 }
 0x75a   : > { %2422 = vmatmul.mubr.msk.bf16.vlgmr.msra.gmra.mrb[24].mxu1 %vm1122_vm5, %v1536_v21  ;;  %2428 = vmatmul.mubr.msk.bf16.vlgmr.msra.gmra.mrb[20].mxu0 %vm1122_vm5, %v1537_v22 }
 0x75b   : > { %2435 = vmatprep.mubr.msk.bf16.mxu1 %vm3414_vm3, %v3413_v30  ;;  %2447 = vmatprep.mubr.msk.bf16.mxu0 %vm3414_vm3, %v3413_v30 }
 0x75c   : > { %2432 = vmatpush3.bf16.msra.mxu1 %v2723_v24  ;;  %2440 = vmatpush3.bf16.msra.mxu0 %v2725_v31 }
 0x75d   : > { %2433 = vmatprep.subr.bf16.mxu1 %v3413_v30  ;;  %2441 = vmatprep.subr.bf16.mxu0 %v3413_v30 }
 0x760   : > { %2434 = vmatpush3.bf16.msra.mxu1 %v2724_v25  ;;  %2442 = vmatpush3.bf16.msra.mxu0 %v2726_v32 }
 0x761   : > { %2443 = vmatprep.subr.bf16.mxu0 %v3413_v30 }
 0x764   : > { %2444 = vmatpush3.bf16.msra.mxu0 %v2727_v51 }
 0x765   : > { %2445 = vmatprep.subr.bf16.mxu0 %v3413_v30 }
 0x768   : > { %2446 = vmatpush3.bf16.msra.mxu0 %v2728_v52 }
 0x7b2   : > { %v1628_v26 = vpop.f32.mrb[16].mxu0 }
 0x7b3   : > { %v2417_v27 = vpop.f32.mrb[17].mxu0 }
 0x7b4   : > { %v1631_v28 = vpop.f32.mrb[18].mxu0 }
 0x7b5   : > { %v2418_v29 = vpop.f32.mrb[19].mxu0 }
 0x825   : > { %v1582_v33 = vpop.f32.mrb[20].mxu1 }
 0x826   : > { %v1629_v34 = vadd.f32 %v1628_v26, %v1582_v33  ;;  %v2411_v35 = vpop.f32.mrb[21].mxu1 }
 0x827   : > { %v1585_v36 = vpop.f32.mrb[22].mxu1 }
 0x828   : > { %v2412_v37 = vpop.f32.mrb[23].mxu1 }
 0x82d   : > { %v1676_v38 = vpop.f32.mrb[24].mxu1  ;;  %v1725_v39 = vpop.f32.mrb[20].mxu0 }
 0x82e   : > { %v1682_v40 = vadd.f32 %v1676_v38, %v1629_v34  ;;  %v2423_v41 = vpop.f32.mrb[25].mxu1  ;;  %v2429_v42 = vpop.f32.mrb[21].mxu0 }
 0x82f   : > { %v1679_v44 = vpop.f32.mrb[26].mxu1  ;;  %v1728_v45 = vpop.f32.mrb[22].mxu0 }
 0x830   : > { %v1731_v46 = vadd.f32 %v1725_v39, %v1682_v40  ;;  %v2424_v47 = vpop.f32.mrb[27].mxu1  ;;  %v2430_v48 = vpop.f32.mrb[23].mxu0 }
 0x832   : > { %v1739_v49 = vadd.f32 %v2275_v43, %v1731_v46 }
 0x834   : > { %v1740_v50 = vpack.c.bf16 %v1739_v49, %v1739_v49 }
 0x836   : > { %2436 = vmatmul.mubr.msk.bf16.vlgmr.msra.gmra.mrb[28].mxu1 %vm1056_vm4, %v1740_v50 }
 0x909   : > { %v1801_v54 = vpop.f32.mrb[28].mxu1 }
 0x90a   : > { %v1802_v55 = vadd.f32 %v2276_v53, %v1801_v54  ;;  %v2437_v56 = vpop.f32.mrb[29].mxu1 }
 0x90b   : > { %v1804_v57 = vpop.f32.mrb[30].mxu1 }
 0x90c   : > { %v1807_v58 = vmax.f32 %v1802_v55, 0.0  ;;  %v2438_v59 = vpop.f32.mrb[31].mxu1 }
 0x90e   : > { %v1808_v60 = vpack.c.bf16 %v1807_v58, %v1807_v58 }
 0x910   : > { %2448 = vmatmul.mubr.msk.bf16.vlgmr.msra.gmra.mrb[24].mxu0 %vm1848_vm9, %v1808_v60 }
 0x9e3   : > { %v1886_v62 = vpop.f32.mrb[24].mxu0 }
 0x9e4   : > { %v1887_v63 = vadd.f32 %v2280_v61, %v1886_v62  ;;  %v2449_v1 = vpop.f32.mrb[25].mxu0 }
 0x9e5   : > { %v1889_v2 = vpop.f32.mrb[26].mxu0 }
 0x9e6   : > { %v1892_v30 = vadd.f32 %v1887_v63, %v4121_v0  ;;  %v2450_v3 = vpop.f32.mrb[27].mxu0 }
 0x9e8   : > { %v1893_v4 = vsel %vm1056_vm4, %v1892_v30, 0.0 }
 0x9e9   : > { %1894 = vadd.xlane.f32.xlu0 %v1893_v4 }
 0xa76   : > { %v1895_v5 = vpop.xlane.xlu0 %1894 }
 0xa77   : > { %v1897_v6 = vmul.f32 0.03125, %v1895_v5 }
 0xa79   : > { %v1898_v7 = vsub.f32 %v1892_v30, %v1897_v6 }
 0xa7b   : > { %v1899_v8 = vmul.f32 %v1898_v7, %v1898_v7 }
 0xa7d   : > { %v1900_v9 = vsel %vm1056_vm4, %v1899_v8, 0.0 }
 0xa7e   : > { %1901 = vadd.xlane.f32.xlu1 %v1900_v9 }
 0xb0b   : > { %v1902_v10 = vpop.xlane.xlu1 %1901 }
 0xb0c   : > { %v1903_v11 = vmul.f32 0.03125, %v1902_v10 }
 0xb0e   : > { %v1904_v12 = vadd.f32 1e-12, %v1903_v11 }
 0xb10   : > { %2745 = vrsqrt.f32 %v1904_v12 }
 0xb1a   : > { %v2746_v0 = vpop.eup %2745 }
 0xb1b   : > { %v1906_v14 = vmul.f32 %v2746_v0, %v1898_v7 }
 0xb1d   : > { %v1914_v16 = vmul.f32 %v2286_v13, %v1906_v14 }
 0xb1f   : > { %v1922_v17 = vadd.f32 %v2287_v15, %v1914_v16 }
 0xb21   : > { %1923 = vst.msk [vmem:[%s4125_s22] sm:$0xff] %vm1056_vm4, %v1922_v17 }
 0xb22   : > { %3242 = shalt.err (!%p3239_p9)
}
 0xb23   : > { %s3243_s9 = scalar_lea.hbm %s4242_s20, 128  ;;  %s3247_s10 = scalar_lea.hbm %s4444_s3, 512 }
 0xb24   : > { %p3244_p3 = scmp.ne.s32.totalorder %s4242_s20, %s3243_s9  ;;  %p3248_p0 = scmp.lt.u32.totalorder %s4242_s20, %s4444_s3 }
 0xb25   : > { %p3249_p5 = scmp.lt.u32.totalorder %s3247_s10, %s3243_s9  ;;  %p3251_p7 = scmp.lt.u32.totalorder %s3243_s9, %s4242_s20 }
 0xb26   : > { %p3245_p11 = pnand %p3244_p3, %p4445_p1 }
 0xb27   : > { %p3250_p13 = por %p3249_p5, %p3248_p0 }
 0xb28   : > { %p3246_p4 = pneg %p3245_p11 }
 0xb29   : > { %p3252_p2 = por %p3251_p7, %p3250_p13 }
 0xb2b   : > { %p3253_p12 = pnand %p3252_p2, %p3246_p4 }
 0xb2d   : > { %3256 = shalt.err (!%p3253_p12)
}
 0xb2e   : > { %2513 = dma.vmem_to_hbm [thread:$0]  (%p4445_p1), %s4244_s29, 128, %s4242_s20, %s1925_s14  }
 0xb2f PF: > { %s4446_s11 = sld [smem:[#allocation43_spill]]  ;;  %p2601_p8 = scmp.ge.s32.totalorder %s3387_s1, 2 }
 0xb30   : > { %p4447_p10 = scmp.ne.s32.totalorder %s4412_s6, 0 }
 0xb32   : > { %p2569_p6 = pnand %p2601_p8, %p4447_p10 }
 0xb35   : > { %s1952_s4 = sand.u32 1, %s4446_s11  }
 0xb36   : > { %s1953_s12 = scalar_lea.sflag [#allocation6], %s1952_s4 }
 0xb37   : > { %3342 = dma.done.wait (!%p2569_p6), %s1953_s12, 128  }
 0xb38   : > { %3344 = vsyncadd (!%p2569_p6), %s1953_s12, 4294967168  ;;  %s43_s1 = sadd.s32 1, %s3387_s1   ;;  %s4448_s28 = smov %s3981_s24 }
 0xb39   : > { %p40_p9 = scmp.ge.s32.totalorder %s43_s1, 6   ;;  %s4449_s27 = sld [smem:[#allocation44_spill]] }
 0xb3a   : > { %s4450_s0 = sld [smem:[#allocation45_spill]]  ;;  %s4451_s20 = sld [smem:[#allocation48_spill]] }
 0xb3b   : > { %s4452_s24 = smov %s3351_s25  ;;  %s4453_s25 = smov %s3355_s26 }
 0xb3c   : > { %s4454_s26 = smov %s4448_s28  ;;  %s4456_s29 = smov %s4467_s8 }
 0xb3d   : > { %s4458_s30 = smov %s3383_s19  ;;  %s4459_s19 = smov %s4465_s17 }
 0xb3e   :  { %42 = sbr.rel (!%p40_p9) target bundleno = 36 (0x24), region = 226 }
 0xb40   : > { %s4455_s28 = smov %s4450_s0  ;;  %s4457_s0 = smov %s4451_s20 }
 0xb45   :  { %1958 = vsyncpa [#allocation5], 1 }
 0xb46   :  { %1960 = vsyncpa [#allocation5 + $0x1], 1 }
 0xb47   :  { %1961 = vsyncpa [#allocation8], 1 }
 0xb48   :  { %1963 = vsyncpa [#allocation8 + $0x1], 1 }
 0xb49   :  { %1964 = vsyncpa [#allocation11], 1 }
 0xb4a   :  { %1965 = vsyncpa [#allocation14], 1 }
 0xb4b   :  { %1966 = vsyncpa [#allocation17], 1 }
 0xb4c   :  { %1967 = vsyncpa [#allocation20], 1 }
 0xb4d   :  { %1968 = vsyncpa [#allocation23], 1 }
 0xb4e   :  { %1969 = vsyncpa [#allocation26], 1 }
 0xb4f   :  { %1970 = vsyncpa [#allocation29], 1 }
 0xb50   :  { %1971 = vsyncpa [#allocation6], 1 }
 0xb51   :  { %1973 = vsyncpa [#allocation6 + $0x1], 1 }

</bundles_post_ra>
